<compile_context>
chip_gen: v6e
topology: v6e:2x2x1
jax: 0.10.0
libtpu: 0.0.40
codegen_flags: <defaults>
</compile_context>

<pallas_src>
import functools

import jax
import jax.numpy as jnp
import numpy as np
from jax.experimental import pallas as pl
from jax.experimental.pallas import tpu as pltpu

EPS = 1e-5       # nn.BatchNorm2d default eps
KSIZE = 3
STRIDE = 2


def conv2d_size_out(size, kernel_size=KSIZE, stride=STRIDE):
    return (size - (kernel_size - 1) - 1) // stride + 1


def _round_up(x, m):
    return ((x + m - 1) // m) * m


# ------------------------------ Pallas kernel -------------------------------

def _fused_forward_kernel(m1_valid, m2_valid, n_taps, r2, m2p, n_pad,
                          p1_ref, w1_ref, g1_ref, be1_ref,
                          gsel_ref, w2_ref, g2_ref, be2_ref,
                          hsel_ref, wh_ref, hb_ref, out_ref):
    f32 = jnp.float32
    bf16 = jnp.bfloat16

    # ---- conv1 as im2col GEMM, then BatchNorm (batch stats) + ReLU ---------
    y1 = jnp.dot(p1_ref[...], w1_ref[...], preferred_element_type=f32)
    inv_m1 = 1.0 / m1_valid
    s1 = jnp.sum(y1, axis=0, keepdims=True)          # padded rows are zero
    q1 = jnp.sum(y1 * y1, axis=0, keepdims=True)
    mean1 = s1 * inv_m1
    var1 = jnp.maximum(q1 * inv_m1 - mean1 * mean1, 0.0)   # biased variance
    scale1 = g1_ref[...] * jax.lax.rsqrt(var1 + EPS)
    shift1 = be1_ref[...] - mean1 * scale1           # conv bias cancels in BN
    a1 = jnp.maximum(y1 * scale1 + shift1, 0.0).astype(bf16)     # (M1P, CP)

    # ---- conv2: single stacked-selection gather + single GEMM --------------
    # gsel_ref is the 9 per-tap 0/1 selection matrices stacked along rows.
    p2_all = jnp.dot(gsel_ref[...], a1, preferred_element_type=f32)  # (T*M2P, CP)
    # Lane-concatenate the per-tap gather results (aligned f32 slices),
    # giving the (M2P, T*CP) im2col matrix for conv2.
    p2_flat = jnp.concatenate(
        [p2_all[t * m2p:(t + 1) * m2p, :] for t in range(n_taps)], axis=1)
    acc2 = jnp.dot(p2_flat.astype(bf16), w2_ref[...],
                   preferred_element_type=f32)                     # (M2P, CP)
    inv_m2 = 1.0 / m2_valid
    s2 = jnp.sum(acc2, axis=0, keepdims=True)
    q2 = jnp.sum(acc2 * acc2, axis=0, keepdims=True)
    mean2 = s2 * inv_m2
    var2 = jnp.maximum(q2 * inv_m2 - mean2 * mean2, 0.0)
    scale2 = g2_ref[...] * jax.lax.rsqrt(var2 + EPS)
    shift2 = be2_ref[...] - mean2 * scale2
    a2 = jnp.maximum(acc2 * scale2 + shift2, 0.0).astype(bf16)     # (M2P, CP)

    # ---- head: NCHW flatten as one stacked row-gather + one GEMM -----------
    rows_all = jnp.dot(hsel_ref[...], a2, preferred_element_type=f32)  # (R2*NP, CP)
    r_flat = jnp.concatenate(
        [rows_all[r * n_pad:(r + 1) * n_pad, :] for r in range(r2)], axis=1)
    out_ref[...] = (jnp.dot(r_flat.astype(bf16), wh_ref[...],
                            preferred_element_type=f32) + hb_ref[...])


# ------------------------------- JAX glue -----------------------------------

def im2col(x_nhwc, ksize=KSIZE, stride=STRIDE):
    """(N,H,W,C) -> (N*OH*OW, ksize*ksize*C), cols ordered (kh, kw, c)."""
    n, h, w, c = x_nhwc.shape
    oh = (h - ksize) // stride + 1
    ow = (w - ksize) // stride + 1
    cols = []
    for kh in range(ksize):
        for kw in range(ksize):
            cols.append(x_nhwc[:, kh:kh + stride * oh:stride,
                               kw:kw + stride * ow:stride, :])
    patches = jnp.stack(cols, axis=3)                  # (N, OH, OW, k*k, C)
    return patches.reshape(n * oh * ow, ksize * ksize * c)


def make_conv_forward(params, n, cin, h, w, mid_n, action_n):
    """Precompute padded/permuted weights + selection matrices ONCE; return a
    jitted forward(x_nchw) -> (n, action_n)."""
    oh1, ow1 = conv2d_size_out(h), conv2d_size_out(w)
    oh2, ow2 = conv2d_size_out(oh1), conv2d_size_out(ow1)
    m1, m2 = n * oh1 * ow1, n * oh2 * ow2
    k1 = KSIZE * KSIZE * cin
    r2 = oh2 * ow2
    n_taps = KSIZE * KSIZE

    # Lane-dense / tile-aligned padded sizes.
    m1p = _round_up(m1, 128)        # conv1 GEMM rows; lane dim of gsel
    k1p = _round_up(k1, 128)        # conv1 contraction dim (lane dim of p1)
    cp = _round_up(mid_n, 128)      # channel dim everywhere
    m2p = _round_up(m2, 8)          # conv2 output rows (sublane-aligned)
    n_pad = _round_up(n, 8)         # batch rows of the head output
    ap = _round_up(action_n, 128)   # head output lanes

    # conv1 weight: (Cout,Cin,KH,KW) -> (KH*KW*Cin, Cout), zero padded.
    w1m = np.zeros((k1p, cp), np.float32)
    w1m[:k1, :mid_n] = np.transpose(np.asarray(params["w1"]),
                                    (2, 3, 1, 0)).reshape(k1, mid_n)

    # conv2 weight: per-tap (Cin, Cout) slabs stacked vertically ->
    # contraction over the joint (tap, channel) axis in one GEMM.
    w2np = np.asarray(params["w2"])
    w2cat = np.zeros((n_taps * cp, cp), np.float32)
    for kh in range(KSIZE):
        for kw in range(KSIZE):
            t = kh * KSIZE + kw
            w2cat[t * cp:t * cp + mid_n, :mid_n] = w2np[:, :, kh, kw].T

    # conv2 im2col selection matrices, stacked along rows (one gather matmul).
    gsel = np.zeros((n_taps * m2p, m1p), np.float32)
    for kh in range(KSIZE):
        for kw in range(KSIZE):
            t = kh * KSIZE + kw
            for b in range(n):
                for oh in range(oh2):
                    for ow_ in range(ow2):
                        dst = b * r2 + oh * ow2 + ow_
                        src = (b * oh1 * ow1
                               + (STRIDE * oh + kh) * ow1
                               + (STRIDE * ow_ + kw))
                        gsel[t * m2p + dst, src] = 1.0

    # Head weight with the PyTorch NCHW flatten (f = c*r2 + r) folded in:
    # per-position (Cin, A) slabs stacked vertically for one GEMM.
    hw = np.asarray(params["hw"])                        # (A, mid_n * r2)
    whcat = np.zeros((r2 * cp, ap), np.float32)
    for r in range(r2):
        for c in range(mid_n):
            whcat[r * cp + c, :action_n] = hw[:, c * r2 + r]

    # Per-position batch-row selection matrices, stacked along rows.
    hsel = np.zeros((r2 * n_pad, m2p), np.float32)
    for r in range(r2):
        for b in range(n):
            hsel[r * n_pad + b, b * r2 + r] = 1.0

    def pad_row(v, width):
        out = np.zeros((1, width), np.float32)
        v = np.asarray(v)
        out[0, :v.shape[0]] = v
        return out

    bf16, f32 = jnp.bfloat16, jnp.float32
    const_args = (
        jnp.asarray(w1m, bf16),
        jnp.asarray(pad_row(params["g1"], cp), f32),
        jnp.asarray(pad_row(params["be1"], cp), f32),
        jnp.asarray(gsel, bf16),
        jnp.asarray(w2cat, bf16),
        jnp.asarray(pad_row(params["g2"], cp), f32),
        jnp.asarray(pad_row(params["be2"], cp), f32),
        jnp.asarray(hsel, bf16),
        jnp.asarray(whcat, bf16),
        jnp.asarray(pad_row(params["hb"], ap), f32),
    )

    flops = 2 * (m1p * k1p * cp
                 + (n_taps * m2p) * m1p * cp
                 + m2p * (n_taps * cp) * cp
                 + (r2 * n_pad) * m2p * cp
                 + n_pad * (r2 * cp) * ap)
    bytes_accessed = (m1p * k1p * 2
                      + sum(int(np.prod(a.shape)) * a.dtype.itemsize
                            for a in const_args)
                      + n_pad * ap * 4)

    def vmem():
        return pl.BlockSpec(memory_space=pltpu.MemorySpace.VMEM)

    fused_call = pl.pallas_call(
        functools.partial(_fused_forward_kernel, float(m1), float(m2),
                          n_taps, r2, m2p, n_pad),
        out_shape=jax.ShapeDtypeStruct((n_pad, ap), jnp.float32),
        in_specs=[vmem() for _ in range(11)],
        out_specs=vmem(),
        cost_estimate=pl.CostEstimate(flops=int(flops),
                                      transcendentals=int(2 * cp),
                                      bytes_accessed=int(bytes_accessed)),
    )

    @jax.jit
    def forward(x_nchw):
        x = jnp.transpose(x_nchw.astype(jnp.float32), (0, 2, 3, 1))  # NHWC
        patches = im2col(x)                                          # (m1, k1)
        p1 = jnp.zeros((m1p, k1p), bf16).at[:m1, :k1].set(patches.astype(bf16))
        out = fused_call(p1, *const_args)
        return out[:n, :action_n]

    return forward


# Pure-JAX f32 reference (same math, via lax.conv) used only as a sanity check.
def ref_forward(x, params):
    def conv(x, w, b):
        y = jax.lax.conv_general_dilated(
            x, w, (STRIDE, STRIDE), "VALID",
            dimension_numbers=("NCHW", "OIHW", "NCHW"))
        return y + b[None, :, None, None]

    def bn(y, g, be):
        mean = y.mean(axis=(0, 2, 3), keepdims=True)
        var = ((y - mean) ** 2).mean(axis=(0, 2, 3), keepdims=True)
        return ((y - mean) * jax.lax.rsqrt(var + EPS) * g[None, :, None, None]
                + be[None, :, None, None])

    y = jax.nn.relu(bn(conv(x, params["w1"], params["b1"]),
                       params["g1"], params["be1"]))
    y = jax.nn.relu(bn(conv(y, params["w2"], params["b2"]),
                       params["g2"], params["be2"]))
    flat = y.reshape(y.shape[0], -1)
    return flat @ params["hw"].T + params["hb"]


# --------------------------------- main --------------------------------------

if __name__ == "__main__":
    # Small shapes consistent with the module: w = h = 16, 3 input channels.
    N, CIN, H, W = 2, 3, 16, 16
    MID_N, ACTION_N = 8, 2

    convw = conv2d_size_out(conv2d_size_out(W))
    convh = conv2d_size_out(conv2d_size_out(H))
    linear_input_size = convw * convh * MID_N

    key = jax.random.PRNGKey(0)
    k = jax.random.split(key, 8)
    params = {
        "w1": 0.1 * jax.random.normal(k[0], (MID_N, CIN, 3, 3), jnp.float32),
        "b1": 0.1 * jax.random.normal(k[1], (MID_N,), jnp.float32),
        "g1": jnp.ones((MID_N,), jnp.float32),    # BatchNorm2d default weight
        "be1": jnp.zeros((MID_N,), jnp.float32),  # BatchNorm2d default bias
        "g2": jnp.ones((MID_N,), jnp.float32),
        "be2": jnp.zeros((MID_N,), jnp.float32),
        "w2": 0.1 * jax.random.normal(k[2], (MID_N, MID_N, 3, 3), jnp.float32),
        "b2": 0.1 * jax.random.normal(k[3], (MID_N,), jnp.float32),
        "hw": 0.1 * jax.random.normal(k[4], (ACTION_N, linear_input_size), jnp.float32),
        "hb": 0.1 * jax.random.normal(k[5], (ACTION_N,), jnp.float32),
    }

    x = jax.random.normal(k[6], (N, CIN, H, W), jnp.float32)

    forward = make_conv_forward(params, N, CIN, H, W, MID_N, ACTION_N)
    out = jax.block_until_ready(forward(x))
    assert out.shape == (N, ACTION_N), out.shape

    ref = jax.block_until_ready(ref_forward(x, params))
    # bf16 MXU operands with f32 accumulation; selection matmuls are exact, so
    # end-to-end error is dominated by the two bf16 activation casts (~1e-2).
    np.testing.assert_allclose(np.asarray(out), np.asarray(ref),
                               rtol=3e-2, atol=3e-2)

    print("KERNEL_OK")
</pallas_src>

<mosaic_0001>
module attributes {stable_mosaic.version = 11 : i64} {
  func.func @_fused_forward_kernel(%arg0: memref<128x128xbf16, #tpu.memory_space<vmem>>, %arg1: memref<128x128xbf16, #tpu.memory_space<vmem>>, %arg2: memref<1x128xf32, #tpu.memory_space<vmem>>, %arg3: memref<1x128xf32, #tpu.memory_space<vmem>>, %arg4: memref<216x128xbf16, #tpu.memory_space<vmem>>, %arg5: memref<1152x128xbf16, #tpu.memory_space<vmem>>, %arg6: memref<1x128xf32, #tpu.memory_space<vmem>>, %arg7: memref<1x128xf32, #tpu.memory_space<vmem>>, %arg8: memref<72x24xbf16, #tpu.memory_space<vmem>>, %arg9: memref<1152x128xbf16, #tpu.memory_space<vmem>>, %arg10: memref<1x128xf32, #tpu.memory_space<vmem>>, %arg11: memref<8x128xf32, #tpu.memory_space<vmem>>) attributes {dimension_semantics = [], scalar_prefetch = 0 : i64, scratch_operands = 0 : i64, tpu.core_type = #tpu.core_type<tc>} {
    %c0 = arith.constant 0 : index
    %c0_0 = arith.constant 0 : index
    %0 = vector.load %arg0[%c0, %c0_0] : memref<128x128xbf16, #tpu.memory_space<vmem>>, vector<128x128xbf16>
    %c0_1 = arith.constant 0 : index
    %c0_2 = arith.constant 0 : index
    %1 = vector.load %arg1[%c0_1, %c0_2] : memref<128x128xbf16, #tpu.memory_space<vmem>>, vector<128x128xbf16>
    %cst = arith.constant dense<0.000000e+00> : vector<128x128xf32>
    %2 = tpu.matmul %0, %1, %cst {dimension_numbers = #tpu.dot_dimension_numbers<[1], [0], [0], [1], [0, 0, 1, 1], [], []>} : vector<128x128xbf16>, vector<128x128xbf16>, vector<128x128xf32> -> vector<128x128xf32>
    %cst_3 = arith.constant dense<0.000000e+00> : vector<128xf32>
    %3 = vector.multi_reduction <add>, %2, %cst_3 [0] : vector<128x128xf32> to vector<128xf32>
    %4 = vector.shape_cast %3 : vector<128xf32> to vector<1x128xf32>
    %5 = arith.mulf %2, %2 : vector<128x128xf32>
    %cst_4 = arith.constant dense<0.000000e+00> : vector<128xf32>
    %6 = vector.multi_reduction <add>, %5, %cst_4 [0] : vector<128x128xf32> to vector<128xf32>
    %7 = vector.shape_cast %6 : vector<128xf32> to vector<1x128xf32>
    %cst_5 = arith.constant 0.0102040814 : f32
    %8 = vector.broadcast %cst_5 : f32 to vector<1x128xf32>
    %9 = arith.mulf %4, %8 : vector<1x128xf32>
    %cst_6 = arith.constant 0.0102040814 : f32
    %10 = vector.broadcast %cst_6 : f32 to vector<1x128xf32>
    %11 = arith.mulf %7, %10 : vector<1x128xf32>
    %12 = arith.mulf %9, %9 : vector<1x128xf32>
    %13 = arith.subf %11, %12 : vector<1x128xf32>
    %cst_7 = arith.constant 0.000000e+00 : f32
    %14 = vector.broadcast %cst_7 : f32 to vector<1x128xf32>
    %15 = arith.maximumf %13, %14 : vector<1x128xf32>
    %c0_8 = arith.constant 0 : index
    %c0_9 = arith.constant 0 : index
    %16 = vector.load %arg2[%c0_8, %c0_9] : memref<1x128xf32, #tpu.memory_space<vmem>>, vector<1x128xf32>
    %cst_10 = arith.constant 9.99999974E-6 : f32
    %17 = vector.broadcast %cst_10 : f32 to vector<1x128xf32>
    %18 = arith.addf %15, %17 : vector<1x128xf32>
    %19 = math.rsqrt %18 : vector<1x128xf32>
    %20 = arith.mulf %16, %19 : vector<1x128xf32>
    %c0_11 = arith.constant 0 : index
    %c0_12 = arith.constant 0 : index
    %21 = vector.load %arg3[%c0_11, %c0_12] : memref<1x128xf32, #tpu.memory_space<vmem>>, vector<1x128xf32>
    %22 = arith.mulf %9, %20 : vector<1x128xf32>
    %23 = arith.subf %21, %22 : vector<1x128xf32>
    %24 = vector.broadcast %20 : vector<1x128xf32> to vector<128x128xf32>
    %25 = arith.mulf %2, %24 : vector<128x128xf32>
    %26 = vector.broadcast %23 : vector<1x128xf32> to vector<128x128xf32>
    %27 = arith.addf %25, %26 : vector<128x128xf32>
    %cst_13 = arith.constant 0.000000e+00 : f32
    %28 = vector.broadcast %cst_13 : f32 to vector<128x128xf32>
    %29 = arith.maximumf %27, %28 : vector<128x128xf32>
    %30 = arith.truncf %29 : vector<128x128xf32> to vector<128x128xbf16>
    %c0_14 = arith.constant 0 : index
    %c0_15 = arith.constant 0 : index
    %31 = vector.load %arg4[%c0_14, %c0_15] : memref<216x128xbf16, #tpu.memory_space<vmem>>, vector<216x128xbf16>
    %cst_16 = arith.constant dense<0.000000e+00> : vector<216x128xf32>
    %32 = tpu.matmul %31, %30, %cst_16 {dimension_numbers = #tpu.dot_dimension_numbers<[1], [0], [0], [1], [0, 0, 1, 1], [], []>} : vector<216x128xbf16>, vector<128x128xbf16>, vector<216x128xf32> -> vector<216x128xf32>
    %33 = vector.extract_strided_slice %32 {offsets = [0, 0], sizes = [24, 128], strides = [1, 1]} : vector<216x128xf32> to vector<24x128xf32>
    %34 = vector.extract_strided_slice %32 {offsets = [24, 0], sizes = [24, 128], strides = [1, 1]} : vector<216x128xf32> to vector<24x128xf32>
    %35 = vector.extract_strided_slice %32 {offsets = [48, 0], sizes = [24, 128], strides = [1, 1]} : vector<216x128xf32> to vector<24x128xf32>
    %36 = vector.extract_strided_slice %32 {offsets = [72, 0], sizes = [24, 128], strides = [1, 1]} : vector<216x128xf32> to vector<24x128xf32>
    %37 = vector.extract_strided_slice %32 {offsets = [96, 0], sizes = [24, 128], strides = [1, 1]} : vector<216x128xf32> to vector<24x128xf32>
    %38 = vector.extract_strided_slice %32 {offsets = [120, 0], sizes = [24, 128], strides = [1, 1]} : vector<216x128xf32> to vector<24x128xf32>
    %39 = vector.extract_strided_slice %32 {offsets = [144, 0], sizes = [24, 128], strides = [1, 1]} : vector<216x128xf32> to vector<24x128xf32>
    %40 = vector.extract_strided_slice %32 {offsets = [168, 0], sizes = [24, 128], strides = [1, 1]} : vector<216x128xf32> to vector<24x128xf32>
    %41 = vector.extract_strided_slice %32 {offsets = [192, 0], sizes = [24, 128], strides = [1, 1]} : vector<216x128xf32> to vector<24x128xf32>
    %42 = tpu.concatenate %33, %34, %35, %36, %37, %38, %39, %40, %41 in 1 : vector<24x128xf32>, vector<24x128xf32>, vector<24x128xf32>, vector<24x128xf32>, vector<24x128xf32>, vector<24x128xf32>, vector<24x128xf32>, vector<24x128xf32>, vector<24x128xf32> -> vector<24x1152xf32>
    %43 = arith.truncf %42 : vector<24x1152xf32> to vector<24x1152xbf16>
    %c0_17 = arith.constant 0 : index
    %c0_18 = arith.constant 0 : index
    %44 = vector.load %arg5[%c0_17, %c0_18] : memref<1152x128xbf16, #tpu.memory_space<vmem>>, vector<1152x128xbf16>
    %cst_19 = arith.constant dense<0.000000e+00> : vector<24x128xf32>
    %45 = tpu.matmul %43, %44, %cst_19 {dimension_numbers = #tpu.dot_dimension_numbers<[1], [0], [0], [1], [0, 0, 1, 1], [], []>} : vector<24x1152xbf16>, vector<1152x128xbf16>, vector<24x128xf32> -> vector<24x128xf32>
    %cst_20 = arith.constant dense<0.000000e+00> : vector<128xf32>
    %46 = vector.multi_reduction <add>, %45, %cst_20 [0] : vector<24x128xf32> to vector<128xf32>
    %47 = vector.shape_cast %46 : vector<128xf32> to vector<1x128xf32>
    %48 = arith.mulf %45, %45 : vector<24x128xf32>
    %cst_21 = arith.constant dense<0.000000e+00> : vector<128xf32>
    %49 = vector.multi_reduction <add>, %48, %cst_21 [0] : vector<24x128xf32> to vector<128xf32>
    %50 = vector.shape_cast %49 : vector<128xf32> to vector<1x128xf32>
    %cst_22 = arith.constant 0.055555556 : f32
    %51 = vector.broadcast %cst_22 : f32 to vector<1x128xf32>
    %52 = arith.mulf %47, %51 : vector<1x128xf32>
    %cst_23 = arith.constant 0.055555556 : f32
    %53 = vector.broadcast %cst_23 : f32 to vector<1x128xf32>
    %54 = arith.mulf %50, %53 : vector<1x128xf32>
    %55 = arith.mulf %52, %52 : vector<1x128xf32>
    %56 = arith.subf %54, %55 : vector<1x128xf32>
    %cst_24 = arith.constant 0.000000e+00 : f32
    %57 = vector.broadcast %cst_24 : f32 to vector<1x128xf32>
    %58 = arith.maximumf %56, %57 : vector<1x128xf32>
    %c0_25 = arith.constant 0 : index
    %c0_26 = arith.constant 0 : index
    %59 = vector.load %arg6[%c0_25, %c0_26] : memref<1x128xf32, #tpu.memory_space<vmem>>, vector<1x128xf32>
    %cst_27 = arith.constant 9.99999974E-6 : f32
    %60 = vector.broadcast %cst_27 : f32 to vector<1x128xf32>
    %61 = arith.addf %58, %60 : vector<1x128xf32>
    %62 = math.rsqrt %61 : vector<1x128xf32>
    %63 = arith.mulf %59, %62 : vector<1x128xf32>
    %c0_28 = arith.constant 0 : index
    %c0_29 = arith.constant 0 : index
    %64 = vector.load %arg7[%c0_28, %c0_29] : memref<1x128xf32, #tpu.memory_space<vmem>>, vector<1x128xf32>
    %65 = arith.mulf %52, %63 : vector<1x128xf32>
    %66 = arith.subf %64, %65 : vector<1x128xf32>
    %67 = vector.broadcast %63 : vector<1x128xf32> to vector<24x128xf32>
    %68 = arith.mulf %45, %67 : vector<24x128xf32>
    %69 = vector.broadcast %66 : vector<1x128xf32> to vector<24x128xf32>
    %70 = arith.addf %68, %69 : vector<24x128xf32>
    %cst_30 = arith.constant 0.000000e+00 : f32
    %71 = vector.broadcast %cst_30 : f32 to vector<24x128xf32>
    %72 = arith.maximumf %70, %71 : vector<24x128xf32>
    %73 = arith.truncf %72 : vector<24x128xf32> to vector<24x128xbf16>
    %c0_31 = arith.constant 0 : index
    %c0_32 = arith.constant 0 : index
    %74 = vector.load %arg8[%c0_31, %c0_32] : memref<72x24xbf16, #tpu.memory_space<vmem>>, vector<72x24xbf16>
    %cst_33 = arith.constant dense<0.000000e+00> : vector<72x128xf32>
    %75 = tpu.matmul %74, %73, %cst_33 {dimension_numbers = #tpu.dot_dimension_numbers<[1], [0], [0], [1], [0, 0, 1, 1], [], []>} : vector<72x24xbf16>, vector<24x128xbf16>, vector<72x128xf32> -> vector<72x128xf32>
    %76 = vector.extract_strided_slice %75 {offsets = [0, 0], sizes = [8, 128], strides = [1, 1]} : vector<72x128xf32> to vector<8x128xf32>
    %77 = vector.extract_strided_slice %75 {offsets = [8, 0], sizes = [8, 128], strides = [1, 1]} : vector<72x128xf32> to vector<8x128xf32>
    %78 = vector.extract_strided_slice %75 {offsets = [16, 0], sizes = [8, 128], strides = [1, 1]} : vector<72x128xf32> to vector<8x128xf32>
    %79 = vector.extract_strided_slice %75 {offsets = [24, 0], sizes = [8, 128], strides = [1, 1]} : vector<72x128xf32> to vector<8x128xf32>
    %80 = vector.extract_strided_slice %75 {offsets = [32, 0], sizes = [8, 128], strides = [1, 1]} : vector<72x128xf32> to vector<8x128xf32>
    %81 = vector.extract_strided_slice %75 {offsets = [40, 0], sizes = [8, 128], strides = [1, 1]} : vector<72x128xf32> to vector<8x128xf32>
    %82 = vector.extract_strided_slice %75 {offsets = [48, 0], sizes = [8, 128], strides = [1, 1]} : vector<72x128xf32> to vector<8x128xf32>
    %83 = vector.extract_strided_slice %75 {offsets = [56, 0], sizes = [8, 128], strides = [1, 1]} : vector<72x128xf32> to vector<8x128xf32>
    %84 = vector.extract_strided_slice %75 {offsets = [64, 0], sizes = [8, 128], strides = [1, 1]} : vector<72x128xf32> to vector<8x128xf32>
    %85 = tpu.concatenate %76, %77, %78, %79, %80, %81, %82, %83, %84 in 1 : vector<8x128xf32>, vector<8x128xf32>, vector<8x128xf32>, vector<8x128xf32>, vector<8x128xf32>, vector<8x128xf32>, vector<8x128xf32>, vector<8x128xf32>, vector<8x128xf32> -> vector<8x1152xf32>
    %86 = arith.truncf %85 : vector<8x1152xf32> to vector<8x1152xbf16>
    %c0_34 = arith.constant 0 : index
    %c0_35 = arith.constant 0 : index
    %87 = vector.load %arg9[%c0_34, %c0_35] : memref<1152x128xbf16, #tpu.memory_space<vmem>>, vector<1152x128xbf16>
    %cst_36 = arith.constant dense<0.000000e+00> : vector<8x128xf32>
    %88 = tpu.matmul %86, %87, %cst_36 {dimension_numbers = #tpu.dot_dimension_numbers<[1], [0], [0], [1], [0, 0, 1, 1], [], []>} : vector<8x1152xbf16>, vector<1152x128xbf16>, vector<8x128xf32> -> vector<8x128xf32>
    %c0_37 = arith.constant 0 : index
    %c0_38 = arith.constant 0 : index
    %89 = vector.load %arg10[%c0_37, %c0_38] : memref<1x128xf32, #tpu.memory_space<vmem>>, vector<1x128xf32>
    %90 = vector.broadcast %89 : vector<1x128xf32> to vector<8x128xf32>
    %91 = arith.addf %88, %90 : vector<8x128xf32>
    %c0_39 = arith.constant 0 : index
    %c0_40 = arith.constant 0 : index
    %92 = vector.load %arg11[%c0_39, %c0_40] : memref<8x128xf32, #tpu.memory_space<vmem>>, vector<8x128xf32>
    tpu.vector_store %arg11[%c0_39, %c0_40], %91 {strides = array<i32>} : memref<8x128xf32, #tpu.memory_space<vmem>>, vector<8x128xf32>,
    return
  }
}

</mosaic_0001>

<bundles_post_ra>
// kernel: forward.1
= control target key start
LH: loop header
LB: loop body
LE: loop exit
PB: predicated region body
PF: predicated region fallthrough
CT: control target
= control target key end

     0   :  { %vm3239_vm0 = vmmov 0   ;;  %vm1591_vm1 = vcmask 1043456   ;;  %vm1575_vm2 = vcmask 195584   ;;  %s3998_s1 = inlined_call_operand.vmem [shape: bf16[128,128], index: 1, kind: input, shape index: {}]   ;;  %s3999_s0 = inlined_call_operand.vmem [shape: bf16[128,128], index: 0, kind: input, shape index: {}]   ;;  %s4000_s4 = inlined_call_operand.vmem [shape: bf16[216,128], index: 4, kind: input, shape index: {}]   ;;  %s4001_s5 = inlined_call_operand.vmem [shape: bf16[1152,128], index: 5, kind: input, shape index: {}]   ;;  %s4002_s2 = inlined_call_operand.vmem [shape: f32[1,128], index: 2, kind: input, shape index: {}, may-alias: {2,6}]   ;;  %s4003_s3 = inlined_call_operand.vmem [shape: f32[1,128], index: 3, kind: input, shape index: {}, may-alias: {3,7}]   ;;  %s4004_s8 = inlined_call_operand.vmem [shape: bf16[72,24], index: 8, kind: input, shape index: {}]   ;;  %s4005_s9 = inlined_call_operand.vmem [shape: bf16[1152,128], index: 9, kind: input, shape index: {}]   ;;  %s4006_s6 = inlined_call_operand.vmem [shape: f32[1,128], index: 6, kind: input, shape index: {}, may-alias: {2,6}]   ;;  %s4007_s7 = inlined_call_operand.vmem [shape: f32[1,128], index: 7, kind: input, shape index: {}, may-alias: {3,7}]   ;;  %s4008_s10 = inlined_call_operand.vmem [shape: f32[1,128], index: 10, kind: input, shape index: {}]   ;;  %s4009_s11 = inlined_call_operand.vmem [shape: f32[8,128], index: 11, kind: output, shape index: {}]  }
   0x1   :  { %v3055_v0 = vld [vmem:[%s3998_s1 + $0x38] sm:$0xff]   ;;  %v3056_v1 = vld [vmem:[%s3998_s1 + $0x30] sm:$0xff]   ;;  %v3057_v2 = vld [vmem:[%s3998_s1 + $0x28] sm:$0xff]  }
   0x2   :  { %2913 = vmatprep.subr.bf16.mxu0 %v3055_v0  ;;  %v3058_v3 = vld [vmem:[%s3998_s1 + $0x20] sm:$0xff]   ;;  %v3059_v5 = vld [vmem:[%s3998_s1 + $0x18] sm:$0xff]   ;;  %v3060_v6 = vld [vmem:[%s3998_s1 + $0x10] sm:$0xff]  }
   0x3   :  { %2914 = vmatpush3.bf16.msra.mxu0 %v3055_v0  ;;  %v3063_v4 = vld [vmem:[%s3999_s0] sm:$0xff]   ;;  %v3061_v7 = vld [vmem:[%s3998_s1 + $0x8] sm:$0xff]   ;;  %v3065_v10 = vld [vmem:[%s3999_s0 + $0x10] sm:$0xff]  }
   0x4   :  { %2915 = vmatprep.subr.bf16.mxu0 %v3056_v1  ;;  %2929 = vmatprep.mubr.bf16.mxu0 %v3063_v4  ;;  %v3062_v8 = vld [vmem:[%s3998_s1] sm:$0xff]   ;;  %v3064_v9 = vld [vmem:[%s3999_s0 + $0x8] sm:$0xff]   ;;  %v3066_v11 = vld [vmem:[%s3999_s0 + $0x18] sm:$0xff]  }
   0x5   :  { %v3067_v12 = vld [vmem:[%s3999_s0 + $0x20] sm:$0xff]   ;;  %v3068_v13 = vld [vmem:[%s3999_s0 + $0x28] sm:$0xff]   ;;  %v3069_v14 = vld [vmem:[%s3999_s0 + $0x30] sm:$0xff]  }
   0x6   :  { %v3070_v15 = vld [vmem:[%s3999_s0 + $0x38] sm:$0xff]   ;;  %v3071_v16 = vld [vmem:[%s4000_s4] sm:$0xff]  }
   0x7   :  { %2916 = vmatpush3.bf16.msra.mxu0 %v3056_v1  ;;  %2961 = vmatprep.mubr.bf16.mxu1 %v3071_v16 }
   0x8   :  { %2917 = vmatprep.subr.bf16.mxu0 %v3057_v2 }
   0xb   :  { %2918 = vmatpush3.bf16.msra.mxu0 %v3057_v2 }
   0xc   :  { %2919 = vmatprep.subr.bf16.mxu0 %v3058_v3 }
   0xf   :  { %2920 = vmatpush3.bf16.msra.mxu0 %v3058_v3 }
  0x10   :  { %2921 = vmatprep.subr.bf16.mxu0 %v3059_v5 }
  0x13   :  { %2922 = vmatpush3.bf16.msra.mxu0 %v3059_v5 }
  0x14   :  { %2923 = vmatprep.subr.bf16.mxu0 %v3060_v6 }
  0x17   :  { %2924 = vmatpush3.bf16.msra.mxu0 %v3060_v6 }
  0x18   :  { %2925 = vmatprep.subr.bf16.mxu0 %v3061_v7 }
  0x1b   :  { %2926 = vmatpush3.bf16.msra.mxu0 %v3061_v7 }
  0x1c   :  { %2927 = vmatprep.subr.bf16.mxu0 %v3062_v8 }
  0x1f   :  { %2928 = vmatpush3.bf16.msra.mxu0 %v3062_v8 }
  0x22   :  { %2930 = vmatmul.mubr.bf16.vlgmr.msra.gmra.mxu0 %v3064_v9 }
  0x23   :  { %2933 = vmatprep.mubr.bf16.mxu0 %v3065_v10 }
  0x2a   :  { %2934 = vmatmul.mubr.bf16.gmra.mxu0 %v3066_v11 }
  0x2b   :  { %2937 = vmatprep.mubr.bf16.mxu0 %v3067_v12 }
  0x32   :  { %2938 = vmatmul.mubr.bf16.gmra.mxu0 %v3068_v13 }
  0x33   :  { %2941 = vmatprep.mubr.bf16.mxu0 %v3069_v14 }
  0x3a   :  { %2942 = vmatmul.mubr.bf16.gmra.mxu0 %v3070_v15 }
  0xe2   :  { %v3351_v17 = vpop.f32.mrf.mxu0 }
  0xe3   :  { %v287_v25 = vmul.f32 %v3351_v17, %v3351_v17 }
  0xe4   :  { %v3353_v18 = vpop.f32.mrf.mxu0 }
  0xe5   :  { %v285_v21 = vmul.f32 %v3353_v18, %v3353_v18 }
  0xe6   :  { %v3355_v19 = vpop.f32.mrf.mxu0 }
  0xe7   :  { %v288_v29 = vmul.f32 %v3355_v19, %v3355_v19 }
  0xe8   :  { %v3357_v20 = vpop.f32.mrf.mxu0 }
  0xe9   :  { %v264_v22 = vadd.f32 %v3357_v20, %v3353_v18  ;;  %v286_v23 = vmul.f32 %v3357_v20, %v3357_v20 }
  0xea   :  { %v3365_v24 = vpop.f32.mrf.mxu0 }
  0xeb   :  { %v265_v26 = vadd.f32 %v3351_v17, %v264_v22  ;;  %v301_v27 = vadd.f32 %v286_v23, %v285_v21  ;;  %v291_v41 = vmul.f32 %v3365_v24, %v3365_v24  ;;  %v3085_v22 = vld [vmem:[%s4001_s5 + $0x78] sm:$0xff]  }
  0xec   :  { %v3370_v28 = vpop.f32.mrf.mxu0  ;;  %2687 = vmatprep.subr.bf16.mxu0 %v3085_v22 }
  0xed   :  { %v302_v30 = vadd.f32 %v301_v27, %v287_v25  ;;  %v266_v31 = vadd.f32 %v3355_v19, %v265_v26  ;;  %v289_v34 = vmul.f32 %v3370_v28, %v3370_v28  ;;  %v3086_v26 = vld [vmem:[%s4001_s5 + $0x38] sm:$0xff]  }
  0xee   :  { %v3375_v32 = vpop.f32.mrf.mxu0  ;;  %2688 = vmatpush3.bf16.msra.mxu0 %v3086_v26 }
  0xef   :  { %v267_v33 = vadd.f32 %v266_v31, %v3370_v28  ;;  %v303_v35 = vadd.f32 %v302_v30, %v288_v29  ;;  %v292_v45 = vmul.f32 %v3375_v32, %v3375_v32  ;;  %v3088_v30 = vld [vmem:[%s4001_s5 + $0x70] sm:$0xff]  }
  0xf0   :  { %v3380_v36 = vpop.f32.mrf.mxu0  ;;  %2689 = vmatprep.subr.bf16.mxu0 %v3088_v30 }
  0xf1   :  { %v304_v37 = vadd.f32 %v303_v35, %v289_v34  ;;  %v268_v38 = vadd.f32 %v267_v33, %v3380_v36  ;;  %v290_v39 = vmul.f32 %v3380_v36, %v3380_v36  ;;  %v3090_v34 = vld [vmem:[%s4001_s5 + $0x30] sm:$0xff]   ;;  %v335_v35 = vlaneseq }
  0xf2   :  { %v3385_v40 = vpop.f32.mrf.mxu0  ;;  %2690 = vmatpush3.bf16.msra.mxu0 %v3090_v34 }
  0xf3   :  { %v269_v42 = vadd.f32 %v3365_v24, %v268_v38  ;;  %v305_v43 = vadd.f32 %v304_v37, %v290_v39  ;;  %v295_v57 = vmul.f32 %v3385_v40, %v3385_v40  ;;  %v3091_v37 = vld [vmem:[%s4001_s5 + $0x68] sm:$0xff]  }
  0xf4   :  { %v3390_v44 = vpop.f32.mrf.mxu0  ;;  %2691 = vmatprep.subr.bf16.mxu0 %v3091_v37 }
  0xf5   :  { %v306_v46 = vadd.f32 %v305_v43, %v291_v41  ;;  %v270_v47 = vadd.f32 %v3375_v32, %v269_v42  ;;  %v293_v50 = vmul.f32 %v3390_v44, %v3390_v44  ;;  %v3092_v41 = vld [vmem:[%s4001_s5 + $0x28] sm:$0xff]  }
  0xf6   :  { %v3395_v48 = vpop.f32.mrf.mxu0  ;;  %2692 = vmatpush3.bf16.msra.mxu0 %v3092_v41 }
  0xf7   :  { %v271_v49 = vadd.f32 %v270_v47, %v3390_v44  ;;  %v307_v51 = vadd.f32 %v306_v46, %v292_v45  ;;  %v296_v61 = vmul.f32 %v3395_v48, %v3395_v48  ;;  %v336_v45 = vshrl.u32 %v335_v35, 7 }
  0xf8   :  { %v3400_v52 = vpop.f32.mrf.mxu0 }
  0xf9   :  { %v308_v53 = vadd.f32 %v307_v51, %v293_v50  ;;  %v272_v54 = vadd.f32 %v271_v49, %v3400_v52  ;;  %v294_v55 = vmul.f32 %v3400_v52, %v3400_v52  ;;  %v3095_v49 = vld [vmem:[%s4001_s5 + $0x60] sm:$0xff]  }
  0xfa   :  { %v3405_v56 = vpop.f32.mrf.mxu0  ;;  %v3096_v50 = vld [vmem:[%s4001_s5 + $0x20] sm:$0xff]   ;;  %2693 = vmatprep.subr.bf16.mxu0 %v3095_v49 }
  0xfb   :  { %v273_v58 = vadd.f32 %v3385_v40, %v272_v54  ;;  %v309_v59 = vadd.f32 %v308_v53, %v294_v55  ;;  %v299_v8 = vmul.f32 %v3405_v56, %v3405_v56  ;;  %v3097_v53 = vld [vmem:[%s4001_s5 + $0x58] sm:$0xff]   ;;  %2694 = vmatpush3.bf16.msra.mxu0 %v3096_v50 }
  0xfc   :  { %v3410_v60 = vpop.f32.mrf.mxu0  ;;  %v3098_v55 = vld [vmem:[%s4001_s5 + $0x18] sm:$0xff]   ;;  %2695 = vmatprep.subr.bf16.mxu0 %v3097_v53 }
  0xfd   :  { %v310_v62 = vadd.f32 %v309_v59, %v295_v57  ;;  %v274_v63 = vadd.f32 %v3395_v48, %v273_v58  ;;  %v297_v2 = vmul.f32 %v3410_v60, %v3410_v60  ;;  %v3461_v57 = vsub.s32 0, %v336_v45  ;;  %v327_v59 = vld [vmem:[%s4002_s2] sm:$0x1] }
  0xfe   :  { %v3415_v0 = vpop.f32.mrf.mxu0 }
  0xff   :  { %v275_v1 = vadd.f32 %v274_v63, %v3410_v60  ;;  %v311_v3 = vadd.f32 %v310_v62, %v296_v61  ;;  %v300_v11 = vmul.f32 %v3415_v0, %v3415_v0  ;;  %2696 = vmatpush3.bf16.msra.mxu0 %v3098_v55  ;;  %v331_v62 = vld [vmem:[%s4003_s3] sm:$0x1] }
 0x100   :  { %v3420_v4 = vpop.f32.mrf.mxu0 }
 0x101   :  { %v312_v5 = vadd.f32 %v311_v3, %v297_v2  ;;  %v276_v6 = vadd.f32 %v275_v1, %v3420_v4  ;;  %v298_v7 = vmul.f32 %v3420_v4, %v3420_v4 }
 0x103   :  { %v277_v9 = vadd.f32 %v3405_v56, %v276_v6  ;;  %v313_v10 = vadd.f32 %v312_v5, %v298_v7 }
 0x105   :  { %v278_v12 = vadd.f32 %v3415_v0, %v277_v9  ;;  %v314_v13 = vadd.f32 %v313_v10, %v299_v8 }
 0x107   :  { %v279_v14 = vrot.slane %v278_v12, 4  ;;  %v315_v15 = vadd.f32 %v314_v13, %v300_v11 }
 0x109   :  { %v280_v16 = vadd.f32 %v279_v14, %v278_v12  ;;  %v316_v21 = vrot.slane %v315_v15, 4 }
 0x10b   :  { %v281_v23 = vrot.slane %v280_v16, 2  ;;  %v317_v25 = vadd.f32 %v316_v21, %v315_v15 }
 0x10d   :  { %v282_v27 = vadd.f32 %v281_v23, %v280_v16  ;;  %v318_v29 = vrot.slane %v317_v25, 2 }
 0x10f   :  { %v283_v31 = vrot.slane %v282_v27, 1  ;;  %v319_v33 = vadd.f32 %v318_v29, %v317_v25 }
 0x111   :  { %v284_v38 = vadd.f32 %v283_v31, %v282_v27  ;;  %v320_v39 = vrot.slane %v319_v33, 1 }
 0x113   :  { %v321_v42 = vadd.f32 %v320_v39, %v319_v33  ;;  %v322_v43 = vmul.f32 0.010204081, %v284_v38 }
 0x115   :  { %v323_v46 = vmul.f32 0.010204081, %v321_v42  ;;  %v324_v47 = vmul.f32 %v322_v43, %v322_v43 }
 0x117   :  { %v325_v51 = vsub.f32 %v323_v46, %v324_v47 }
 0x119   :  { %v326_v54 = vmax.f32 %v325_v51, 0.0 }
 0x11b   :  { %v328_v58 = vadd.f32 1e-05, %v326_v54 }
 0x11d   :  { %3234 = vrsqrt.f32 %v328_v58 }
 0x12a   :  { %v3235_v61 = vpop.eup %3234 }
 0x12b   :  { %v330_v63 = vmul.f32 %v3235_v61, %v327_v59 }
 0x12d   :  { %v332_v1 = vmul.f32 %v330_v63, %v322_v43  ;;  %v338_v2 = vrot.slane %v330_v63, %v3461_v57  ;;  %v3073_v63 = vld [vmem:[%s4000_s4 + $0x10] sm:$0xff]  }
 0x12f   :  { %v333_v3 = vsub.f32 %v331_v62, %v332_v1  ;;  %v353_v5 = vmul.f32 %v338_v2, %v3420_v4  ;;  %v354_v7 = vmul.f32 %v3405_v56, %v338_v2  ;;  %v355_v8 = vmul.f32 %v3415_v0, %v338_v2  ;;  %v3089_v1 = vld [vmem:[%s4001_s5 + $0xb8] sm:$0xff]  }
 0x130   :  { %v352_v9 = vmul.f32 %v338_v2, %v3410_v60  ;;  %v350_v10 = vmul.f32 %v3385_v40, %v338_v2  ;;  %v351_v11 = vmul.f32 %v3395_v48, %v338_v2  ;;  %v348_v12 = vmul.f32 %v338_v2, %v3390_v44 }
 0x131   :  { %v360_v6 = vrot.slane %v333_v3, %v3461_v57  ;;  %v349_v13 = vmul.f32 %v338_v2, %v3400_v52  ;;  %v346_v52 = vmul.f32 %v3365_v24, %v338_v2  ;;  %v347_v33 = vmul.f32 %v3375_v32, %v338_v2  ;;  %v3094_v3 = vld [vmem:[%s4001_s5 + $0xb0] sm:$0xff]  }
 0x132   :  { %v344_v41 = vmul.f32 %v338_v2, %v3370_v28  ;;  %v345_v42 = vmul.f32 %v338_v2, %v3380_v36  ;;  %v342_v24 = vmul.f32 %v3351_v17, %v338_v2  ;;  %v343_v32 = vmul.f32 %v3355_v19, %v338_v2 }
 0x133   :  { %v375_v14 = vadd.f32 %v360_v6, %v353_v5  ;;  %v376_v15 = vadd.f32 %v360_v6, %v354_v7  ;;  %v377_v16 = vadd.f32 %v360_v6, %v355_v8  ;;  %v374_v4 = vadd.f32 %v360_v6, %v352_v9  ;;  %v3099_v5 = vld [vmem:[%s4001_s5 + $0xe8] sm:$0xff]   ;;  %v3075_v7 = vld [vmem:[%s4000_s4 + $0x20] sm:$0xff]  }
 0x134   :  { %v372_v21 = vadd.f32 %v360_v6, %v350_v10  ;;  %v373_v22 = vadd.f32 %v360_v6, %v351_v11  ;;  %v370_v23 = vadd.f32 %v360_v6, %v348_v12  ;;  %v371_v56 = vadd.f32 %v360_v6, %v349_v13  ;;  %v3100_v8 = vld [vmem:[%s4001_s5 + $0xa8] sm:$0xff]   ;;  %v3077_v10 = vld [vmem:[%s4000_s4 + $0x30] sm:$0xff]   ;;  %v3078_v11 = vld [vmem:[%s4000_s4 + $0x38] sm:$0xff]  }
 0x135   :  { %v392_v25 = vmax.f32 %v376_v15, 0.0  ;;  %v393_v0 = vmax.f32 %v377_v16, 0.0  ;;  %v390_v26 = vmax.f32 %v374_v4, 0.0  ;;  %v391_v60 = vmax.f32 %v375_v14, 0.0  ;;  %v3076_v9 = vld [vmem:[%s4000_s4 + $0x28] sm:$0xff]   ;;  %v3079_v12 = vld [vmem:[%s4000_s4 + $0x40] sm:$0xff]  }
 0x136   :  { %v388_v27 = vmax.f32 %v372_v21, 0.0  ;;  %v389_v40 = vmax.f32 %v373_v22, 0.0  ;;  %v386_v29 = vmax.f32 %v370_v23, 0.0  ;;  %v387_v48 = vmax.f32 %v371_v56, 0.0  ;;  %v3080_v13 = vld [vmem:[%s4000_s4 + $0x48] sm:$0xff]   ;;  %v3081_v14 = vld [vmem:[%s4000_s4 + $0x50] sm:$0xff]  }
 0x137   :  { %v401_v30 = vpack.c.bf16 %v393_v0, %v392_v25  ;;  %v400_v34 = vpack.c.bf16 %v391_v60, %v390_v26  ;;  %v368_v35 = vadd.f32 %v360_v6, %v346_v52  ;;  %v369_v37 = vadd.f32 %v360_v6, %v347_v33  ;;  %v3082_v15 = vld [vmem:[%s4000_s4 + $0x58] sm:$0xff]   ;;  %v3083_v16 = vld [vmem:[%s4000_s4 + $0x60] sm:$0xff]   ;;  %v3084_v4 = vld [vmem:[%s4000_s4 + $0x68] ss:$0 sps:$4 sm:$0xff]  }
 0x138   :  { %v399_v44 = vpack.c.bf16 %v389_v40, %v388_v27  ;;  %v398_v31 = vpack.c.bf16 %v387_v48, %v386_v29  ;;  %v366_v43 = vadd.f32 %v360_v6, %v344_v41  ;;  %v367_v45 = vadd.f32 %v360_v6, %v345_v42  ;;  %v3101_v21 = vld [vmem:[%s4001_s5 + $0x50] sm:$0xff]   ;;  %v3103_v23 = vld [vmem:[%s4001_s5 + $0x48] sm:$0xff]   ;;  %v3104_v56 = vld [vmem:[%s4001_s5 + $0xe0] sm:$0xff]  }
 0x139   :  { %2945 = vmatprep.subr.bf16.mxu1 %v401_v30  ;;  %v384_v38 = vmax.f32 %v368_v35, 0.0  ;;  %v385_v39 = vmax.f32 %v369_v37, 0.0  ;;  %v364_v46 = vadd.f32 %v360_v6, %v342_v24  ;;  %v365_v51 = vadd.f32 %v360_v6, %v343_v32  ;;  %v3102_v22 = vld [vmem:[%s4001_s5 + $0x10] sm:$0xff]   ;;  %2697 = vmatprep.subr.bf16.mxu0 %v3101_v21  ;;  %v3105_v25 = vld [vmem:[%s4001_s5 + $0x8] sm:$0xff]   ;;  %v3106_v0 = vld [vmem:[%s4001_s5 + $0xa0] sm:$0xff]  }
 0x13a   :  { %2946 = vmatpush3.bf16.msra.mxu1 %v401_v30  ;;  %v382_v49 = vmax.f32 %v366_v43, 0.0  ;;  %v383_v50 = vmax.f32 %v367_v45, 0.0  ;;  %v340_v53 = vmul.f32 %v338_v2, %v3353_v18  ;;  %v341_v28 = vmul.f32 %v338_v2, %v3357_v20  ;;  %v3087_v18 = vld [vmem:[%s4001_s5 + $0xf8] sm:$0xff]   ;;  %v3072_v20 = vld [vmem:[%s4000_s4 + $0x8] sm:$0xff]   ;;  %v3093_v2 = vld [vmem:[%s4001_s5 + $0xf0] sm:$0xff]   ;;  %2698 = vmatpush3.bf16.msra.mxu0 %v3102_v22 }
 0x13b   :  { %2947 = vmatprep.subr.bf16.mxu1 %v400_v34  ;;  %v397_v47 = vpack.c.bf16 %v385_v39, %v384_v38  ;;  %v380_v36 = vmax.f32 %v364_v46, 0.0  ;;  %v381_v55 = vmax.f32 %v365_v51, 0.0  ;;  %2699 = vmatprep.subr.bf16.mxu0 %v3103_v23  ;;  %v3107_v26 = vld [vmem:[%s4001_s5 + $0x40] sm:$0xff]   ;;  %v3108_v60 = vld [vmem:[%s4001_s5 + $0xd8] sm:$0xff]   ;;  %v3111_v29 = vld [vmem:[%s4001_s5 + $0xd0] sm:$0xff]  }
 0x13c   :  { %v396_v54 = vpack.c.bf16 %v383_v50, %v382_v49  ;;  %v362_v58 = vadd.f32 %v360_v6, %v340_v53  ;;  %v363_v59 = vadd.f32 %v360_v6, %v341_v28  ;;  %v3074_v6 = vld [vmem:[%s4000_s4 + $0x18] sm:$0xff]   ;;  %v3109_v27 = vld [vmem:[%s4001_s5] sm:$0xff]   ;;  %v3113_v30 = vld [vmem:[%s4001_s5 + $0x90] sm:$0xff]  }
 0x13d   :  { %v395_v17 = vpack.c.bf16 %v381_v55, %v380_v36  ;;  %v3110_v40 = vld [vmem:[%s4001_s5 + $0x98] sm:$0xff]   ;;  %v3119_v52 = vld [vmem:[%s4001_s5 + $0xc0] sm:$0xff]   ;;  %v3116_v46 = vld [vmem:[%s4001_s5 + $0x170] sm:$0xff]  }
 0x13e   :  { %2948 = vmatpush3.bf16.msra.mxu1 %v400_v34  ;;  %v378_v19 = vmax.f32 %v362_v58, 0.0  ;;  %v379_v61 = vmax.f32 %v363_v59, 0.0  ;;  %2700 = vmatpush3.bf16.msra.mxu0 %v3105_v25  ;;  %v3112_v48 = vld [vmem:[%s4001_s5 + $0x178] sm:$0xff]   ;;  %v3121_v33 = vld [vmem:[%s4001_s5 + $0x80] sm:$0xff]   ;;  %v3118_v50 = vld [vmem:[%s4001_s5 + $0x130] sm:$0xff]  }
 0x13f   :  { %2949 = vmatprep.subr.bf16.mxu1 %v399_v44  ;;  %2701 = vmatprep.subr.bf16.mxu0 %v3107_v26  ;;  %v3124_v34 = vld [vmem:[%s4001_s5 + $0x1f8] sm:$0xff]   ;;  %v3120_v53 = vld [vmem:[%s4001_s5 + $0x168] sm:$0xff]   ;;  %v3123_v58 = vld [vmem:[%s4001_s5 + $0x160] sm:$0xff]  }
 0x140   :  { %v394_v62 = vpack.c.bf16 %v379_v61, %v378_v19  ;;  %v3114_v45 = vld [vmem:[%s4001_s5 + $0x138] sm:$0xff]   ;;  %v3122_v36 = vld [vmem:[%s4001_s5 + $0x128] sm:$0xff]   ;;  %v3125_v19 = vld [vmem:[%s4001_s5 + $0x120] sm:$0xff]  }
 0x141   :  { %v3126_v61 = vld [vmem:[%s4001_s5 + $0x1b8] sm:$0xff]   ;;  %v3137_v21 = vld [vmem:[%s4001_s5 + $0x108] sm:$0xff]   ;;  %v3138_v22 = vld [vmem:[%s4001_s5 + $0x1a0] sm:$0xff]  }
 0x142   :  { %2950 = vmatpush3.bf16.msra.mxu1 %v399_v44  ;;  %2702 = vmatpush3.bf16.msra.mxu0 %v3109_v27  ;;  %v3115_v44 = vld [vmem:[%s4001_s5 + $0xc8] sm:$0xff]   ;;  %v3140_v25 = vld [vmem:[%s4001_s5 + $0x1d8] sm:$0xff]   ;;  %v3141_v26 = vld [vmem:[%s4001_s5 + $0x100] sm:$0xff]  }
 0x143   :  { %2951 = vmatprep.subr.bf16.mxu1 %v398_v31  ;;  %2743 = vmatprep.subr.bf16.mxu0 %v3112_v48  ;;  %v3143_v27 = vld [vmem:[%s4001_s5 + $0x1d0] sm:$0xff]  }
 0x146   :  { %2952 = vmatpush3.bf16.msra.mxu1 %v398_v31  ;;  %v3117_v31 = vld [vmem:[%s4001_s5 + $0x88] sm:$0xff]  }
 0x147   :  { %2953 = vmatprep.subr.bf16.mxu1 %v397_v47 }
 0x14a   :  { %2954 = vmatpush3.bf16.msra.mxu1 %v397_v47 }
 0x14b   :  { %2955 = vmatprep.subr.bf16.mxu1 %v396_v54 }
 0x14e   :  { %2956 = vmatpush3.bf16.msra.mxu1 %v396_v54 }
 0x14f   :  { %2957 = vmatprep.subr.bf16.mxu1 %v395_v17 }
 0x152   :  { %2958 = vmatpush3.bf16.msra.mxu1 %v395_v17 }
 0x153   :  { %2959 = vmatprep.subr.bf16.mxu1 %v394_v62 }
 0x156   :  { %2960 = vmatpush3.bf16.msra.mxu1 %v394_v62 }
 0x157   :  { %2715 = vmatprep.subr.bf16.mxu1 %v3087_v18 }
 0x159   :  { %2962 = vmatmul.mubr.bf16.vlgmr.msra.gmra.mxu1 %v3072_v20 }
 0x15a   :  { %2965 = vmatprep.mubr.bf16.mxu1 %v3073_v63  ;;  %2716 = vmatpush3.bf16.msra.mxu1 %v3089_v1  ;;  %v3127_v63 = vld [vmem:[%s4001_s5 + $0x158] sm:$0xff]   ;;  %v3128_v1 = vld [vmem:[%s4001_s5 + $0x1f0] sm:$0xff]  }
 0x15b   :  { %2717 = vmatprep.subr.bf16.mxu1 %v3093_v2 }
 0x15e   :  { %2718 = vmatpush3.bf16.msra.mxu1 %v3094_v3  ;;  %v3129_v3 = vld [vmem:[%s4001_s5 + $0x118] sm:$0xff]  }
 0x15f   :  { %2719 = vmatprep.subr.bf16.mxu1 %v3099_v5  ;;  %v3130_v5 = vld [vmem:[%s4001_s5 + $0x1b0] sm:$0xff]  }
 0x161   :  { %2966 = vmatmul.mubr.bf16.gmra.mxu1 %v3074_v6 }
 0x162   :  { %2969 = vmatprep.mubr.bf16.mxu1 %v3075_v7  ;;  %2720 = vmatpush3.bf16.msra.mxu1 %v3100_v8  ;;  %v3131_v7 = vld [vmem:[%s4001_s5 + $0x150] sm:$0xff]   ;;  %v3132_v8 = vld [vmem:[%s4001_s5 + $0x1e8] sm:$0xff]  }
 0x163   :  { %2721 = vmatprep.subr.bf16.mxu1 %v3104_v56  ;;  %v3139_v56 = vld [vmem:[%s4001_s5 + $0x140] sm:$0xff]  }
 0x166   :  { %2722 = vmatpush3.bf16.msra.mxu1 %v3106_v0 }
 0x167   :  { %2723 = vmatprep.subr.bf16.mxu1 %v3108_v60  ;;  %v3142_v60 = vld [vmem:[%s4001_s5 + $0x198] sm:$0xff]  }
 0x169   :  { %2970 = vmatmul.mubr.bf16.gmra.mxu1 %v3076_v9 }
 0x16a   :  { %2973 = vmatprep.mubr.bf16.mxu1 %v3077_v10  ;;  %2724 = vmatpush3.bf16.msra.mxu1 %v3110_v40  ;;  %v3133_v10 = vld [vmem:[%s4001_s5 + $0x110] sm:$0xff]   ;;  %v3144_v40 = vld [vmem:[%s4001_s5 + $0x238] sm:$0xff]  }
 0x16b   :  { %2725 = vmatprep.subr.bf16.mxu1 %v3111_v29 }
 0x16e   :  { %2726 = vmatpush3.bf16.msra.mxu1 %v3113_v30  ;;  %v3145_v30 = vld [vmem:[%s4001_s5 + $0x190] sm:$0xff]  }
 0x16f   :  { %2727 = vmatprep.subr.bf16.mxu1 %v3115_v44 }
 0x171   :  { %2974 = vmatmul.mubr.bf16.gmra.mxu1 %v3078_v11  ;;  %v3134_v11 = vld [vmem:[%s4001_s5 + $0x1a8] sm:$0xff]  }
 0x172   :  { %2977 = vmatprep.mubr.bf16.mxu1 %v3079_v12  ;;  %2728 = vmatpush3.bf16.msra.mxu1 %v3117_v31  ;;  %v3146_v31 = vld [vmem:[%s4001_s5 + $0x1c8] sm:$0xff]  }
 0x173   :  { %2729 = vmatprep.subr.bf16.mxu1 %v3119_v52 }
 0x176   :  { %2730 = vmatpush3.bf16.msra.mxu1 %v3121_v33 }
 0x177   :  { %2771 = vmatprep.subr.bf16.mxu1 %v3124_v34  ;;  %v3147_v34 = vld [vmem:[%s4001_s5 + $0x230] sm:$0xff]  }
 0x179   :  { %2978 = vmatmul.mubr.bf16.gmra.mxu1 %v3080_v13 }
 0x17a   :  { %2981 = vmatprep.mubr.bf16.mxu1 %v3081_v14  ;;  %v3135_v14 = vld [vmem:[%s4001_s5 + $0x148] sm:$0xff]  }
 0x181   :  { %2982 = vmatmul.mubr.bf16.gmra.mxu1 %v3082_v15  ;;  %v3136_v15 = vld [vmem:[%s4001_s5 + $0x1e0] sm:$0xff]  }
 0x182   :  { %2985 = vmatprep.mubr.bf16.mxu1 %v3083_v16 }
 0x189   :  { %2986 = vmatmul.mubr.bf16.gmra.mxu1 %v3084_v4 }
 0x219   :  { %v2963_v35 = vpop.f32.mrf.mxu1 }
 0x21a   :  { %v664_v54 = vpack.c.bf16 %v2963_v35, %v2963_v35 }
 0x21b   :  { %v545_v37 = vpop.f32.mrf.mxu1 }
 0x21d   :  { %v2964_v38 = vpop.f32.mrf.mxu1 }
 0x21f   :  { %v548_v39 = vpop.f32.mrf.mxu1 }
 0x220   :  { %v655_v24 = vpack.c.bf16 %v548_v39, %v545_v37  ;;  %v3148_v37 = vld [vmem:[%s4001_s5 + $0x188] sm:$0xff]   ;;  %v3149_v39 = vld [vmem:[%s4001_s5 + $0x1c0] sm:$0xff]  }
 0x221   :  { %v2967_v41 = vpop.f32.mrf.mxu1 }
 0x223   :  { %v561_v42 = vpop.f32.mrf.mxu1 }
 0x224   :  { %v656_v43 = vpack.c.bf16 %v561_v42, %v2964_v38  ;;  %v3150_v42 = vld [vmem:[%s4001_s5 + $0x228] sm:$0xff]  }
 0x225   :  { %v2968_v32 = vpop.f32.mrf.mxu1 }
 0x226   :  { %1281 = vmatprep.mubr.bf16.mxu0 %v656_v43  ;;  %v657_v62 = vpack.c.bf16 %v2968_v32, %v2967_v41 }
 0x227   :  { %v564_v47 = vpop.f32.mrf.mxu1  ;;  %1282 = vmatmul.mubr.bf16.vlgmr.msra.gmra.mxu0 %v655_v24 }
 0x228   :  { %v665_v49 = vpack.c.bf16 %v564_v47, %v564_v47  ;;  %2744 = vmatpush3.bf16.msra.mxu0 %v3114_v45  ;;  %v3151_v45 = vld [vmem:[%s4001_s5 + $0x180] sm:$0xff]  }
 0x229   :  { %v2971_v51 = vpop.f32.mrf.mxu1  ;;  %2745 = vmatprep.subr.bf16.mxu0 %v3116_v46  ;;  %v3152_v46 = vld [vmem:[%s4001_s5 + $0x220] sm:$0xff]  }
 0x22a   :  { %1289 = vmatprep.mubr.bf16.mxu0 %v665_v49 }
 0x22b   :  { %v577_v28 = vpop.f32.mrf.mxu1 }
 0x22c   :  { %2746 = vmatpush3.bf16.msra.mxu0 %v3118_v50  ;;  %v666_v12 = vpack.c.bf16 %v577_v28, %v577_v28  ;;  %v3154_v28 = vld [vmem:[%s4001_s5 + $0x210] sm:$0xff]  }
 0x22d   :  { %v2972_v55 = vpop.f32.mrf.mxu1  ;;  %2747 = vmatprep.subr.bf16.mxu0 %v3120_v53  ;;  %v3153_v53 = vld [vmem:[%s4001_s5 + $0x218] sm:$0xff]  }
 0x22e   :  { %v667_v18 = vpack.c.bf16 %v2972_v55, %v2972_v55  ;;  %v3156_v55 = vld [vmem:[%s4001_s5 + $0x200] sm:$0xff]  }
 0x22f   :  { %v580_v59 = vpop.f32.mrf.mxu1  ;;  %1290 = vmatmul.mubr.bf16.gmra.mxu0 %v664_v54  ;;  %v3155_v54 = vld [vmem:[%s4001_s5 + $0x208] sm:$0xff]  }
 0x230   :  { %v658_v17 = vpack.c.bf16 %v2971_v51, %v580_v59  ;;  %2748 = vmatpush3.bf16.msra.mxu0 %v3122_v36  ;;  %v3238_v59 = vmov 0.0  }
 0x231   :  { %v3622_v20 = vpop.f32.mrf.mxu1  ;;  %2749 = vmatprep.subr.bf16.mxu0 %v3123_v58 }
 0x232   :  { %1329 = vmatprep.mubr.bf16.mxu1 %v658_v17  ;;  %v668_v24 = vpack.c.bf16 %v3622_v20, %v3622_v20 }
 0x233   :  { %v593_v2 = vpop.f32.mrf.mxu1  ;;  %1330 = vmatmul.mubr.bf16.vlgmr.msra.gmra.mxu1 %v657_v62 }
 0x234   :  { %2750 = vmatpush3.bf16.msra.mxu0 %v3125_v19  ;;  %2772 = vmatpush3.bf16.msra.mxu1 %v3126_v61 }
 0x235   :  { %1337 = vmatprep.mubr.bf16.mxu1 %v667_v18  ;;  %v2976_v6 = vpop.f32.mrf.mxu1  ;;  %2751 = vmatprep.subr.bf16.mxu0 %v3127_v63 }
 0x236   :  { %2773 = vmatprep.subr.bf16.mxu1 %v3128_v1 }
 0x237   :  { %v596_v9 = vpop.f32.mrf.mxu1 }
 0x238   :  { %2752 = vmatpush3.bf16.msra.mxu0 %v3129_v3  ;;  %2774 = vmatpush3.bf16.msra.mxu1 %v3130_v5  ;;  %v659_v44 = vpack.c.bf16 %v596_v9, %v593_v2 }
 0x239   :  { %v3648_v13 = vpop.f32.mrf.mxu1  ;;  %2753 = vmatprep.subr.bf16.mxu0 %v3131_v7  ;;  %2775 = vmatprep.subr.bf16.mxu1 %v3132_v8 }
 0x23b   :  { %v609_v16 = vpop.f32.mrf.mxu1  ;;  %1338 = vmatmul.mubr.bf16.gmra.mxu1 %v666_v12 }
 0x23c   :  { %v660_v4 = vpack.c.bf16 %v609_v16, %v2976_v6  ;;  %2754 = vmatpush3.bf16.msra.mxu0 %v3133_v10  ;;  %2776 = vmatpush3.bf16.msra.mxu1 %v3134_v11  ;;  %v3162_v16 = vld [vmem:[%s4005_s9 + $0x78] sm:$0xff]  }
 0x23d   :  { %2755 = vmatprep.subr.bf16.mxu0 %v3135_v14  ;;  %2777 = vmatprep.subr.bf16.mxu1 %v3136_v15  ;;  %v2980_v23 = vpop.f32.mrf.mxu1 }
 0x23e   :  { %1377 = vmatprep.mubr.bf16.mxu0 %v660_v4  ;;  %v661_v51 = vpack.c.bf16 %v2980_v23, %v3648_v13 }
 0x23f   :  { %v612_v0 = vpop.f32.mrf.mxu1 }
 0x240   :  { %2756 = vmatpush3.bf16.msra.mxu0 %v3137_v21  ;;  %2778 = vmatpush3.bf16.msra.mxu1 %v3138_v22  ;;  %v669_v33 = vpack.c.bf16 %v612_v0, %v612_v0  ;;  %v3163_v21 = vld [vmem:[%s4005_s9 + $0x38] sm:$0xff]   ;;  %v3164_v22 = vld [vmem:[%s4005_s9 + $0x70] sm:$0xff]   ;;  %v3166_v0 = vld [vmem:[%s4005_s9 + $0x68] sm:$0xff]  }
 0x241   :  { %2757 = vmatprep.subr.bf16.mxu0 %v3139_v56  ;;  %2779 = vmatprep.subr.bf16.mxu1 %v3140_v25  ;;  %v2983_v29 = vpop.f32.mrf.mxu1  ;;  %v3165_v25 = vld [vmem:[%s4005_s9 + $0x30] sm:$0xff]  }
 0x243   :  { %v625_v48 = vpop.f32.mrf.mxu1 }
 0x244   :  { %2758 = vmatpush3.bf16.msra.mxu0 %v3141_v26  ;;  %2780 = vmatpush3.bf16.msra.mxu1 %v3142_v60  ;;  %v670_v36 = vpack.c.bf16 %v625_v48, %v625_v48 }
 0x245   :  { %2781 = vmatprep.subr.bf16.mxu1 %v3143_v27  ;;  %2989 = vmatprep.subr.bf16.mxu0 %v3144_v40  ;;  %v2984_v52 = vpop.f32.mrf.mxu1 }
 0x246   :  { %v671_v49 = vpack.c.bf16 %v2984_v52, %v2984_v52 }
 0x247   :  { %1378 = vmatmul.mubr.bf16.vlgmr.msra.gmra.mxu0 %v659_v44  ;;  %v628_v35 = vpop.f32.mrf.mxu1  ;;  %v3172_v44 = vld [vmem:[%s4005_s9 + $0x20] sm:$0xff]  }
 0x248   :  { %1385 = vmatprep.mubr.bf16.mxu0 %v669_v33  ;;  %2782 = vmatpush3.bf16.msra.mxu1 %v3145_v30  ;;  %v662_v38 = vpack.c.bf16 %v2983_v29, %v628_v35  ;;  %v3170_v29 = vld [vmem:[%s4005_s9 + $0x60] sm:$0xff]   ;;  %v3178_v35 = vld [vmem:[%s4005_s9 + $0x50] sm:$0xff]  }
 0x249   :  { %2990 = vmatpush3.bf16.msra.mxu0 %v3144_v40  ;;  %2783 = vmatprep.subr.bf16.mxu1 %v3146_v31  ;;  %v2987_v41 = vpop.f32.mrf.mxu1  ;;  %v3168_v40 = vld [vmem:[%s4005_s9 + $0x28] sm:$0xff]   ;;  %v3174_v31 = vld [vmem:[%s4005_s9 + $0x58] sm:$0xff]  }
 0x24a   :  { %2991 = vmatprep.subr.bf16.mxu0 %v3147_v34  ;;  %1425 = vmatprep.mubr.bf16.mxu1 %v662_v38  ;;  %v672_v58 = vpack.c.bf16 %v2987_v41, %v2987_v41 }
 0x24b   :  { %v641_v43 = vpop.f32.mrf.mxu1 }
 0x24c   :  { %2784 = vmatpush3.bf16.msra.mxu1 %v3148_v37 }
 0x24d   :  { %2992 = vmatpush3.bf16.msra.mxu0 %v3147_v34  ;;  %2785 = vmatprep.subr.bf16.mxu1 %v3149_v39  ;;  %v2988_v32 = vpop.f32.mrf.mxu1  ;;  %v3176_v34 = vld [vmem:[%s4005_s9 + $0x18] sm:$0xff]   ;;  %v3180_v39 = vld [vmem:[%s4005_s9 + $0x10] sm:$0xff]  }
 0x24e   :  { %2993 = vmatprep.subr.bf16.mxu0 %v3150_v42 }
 0x24f   :  { %1386 = vmatmul.mubr.bf16.gmra.mxu0 %v668_v24  ;;  %v644_v47 = vpop.f32.mrf.mxu1 }
 0x250   :  { %2786 = vmatpush3.bf16.msra.mxu1 %v3151_v45  ;;  %v663_v50 = vpack.c.bf16 %v644_v47, %v641_v43 }
 0x251   :  { %2994 = vmatpush3.bf16.msra.mxu0 %v3150_v42  ;;  %2816 = vmatprep.subr.bf16.mxu1 %v3162_v16  ;;  %v3182_v42 = vld [vmem:[%s4005_s9 + $0x48] sm:$0xff]  }
 0x252   :  { %2995 = vmatprep.subr.bf16.mxu0 %v3152_v46  ;;  %3005 = vmatprep.mubr.bf16.mxu0 %v663_v50 }
 0x253   :  { %1426 = vmatmul.mubr.bf16.vlgmr.msra.gmra.mxu1 %v661_v51 }
 0x254   :  { %1433 = vmatprep.mubr.bf16.mxu1 %v671_v49  ;;  %2817 = vmatpush3.bf16.msra.mxu1 %v3163_v21 }
 0x255   :  { %2996 = vmatpush3.bf16.msra.mxu0 %v3152_v46  ;;  %2818 = vmatprep.subr.bf16.mxu1 %v3164_v22 }
 0x256   :  { %2997 = vmatprep.subr.bf16.mxu0 %v3153_v53 }
 0x258   :  { %2819 = vmatpush3.bf16.msra.mxu1 %v3165_v25 }
 0x259   :  { %2998 = vmatpush3.bf16.msra.mxu0 %v3153_v53  ;;  %2820 = vmatprep.subr.bf16.mxu1 %v3166_v0 }
 0x25a   :  { %2999 = vmatprep.subr.bf16.mxu0 %v3154_v28 }
 0x25b   :  { %1434 = vmatmul.mubr.bf16.gmra.mxu1 %v670_v36 }
 0x25c   :  { %2821 = vmatpush3.bf16.msra.mxu1 %v3168_v40 }
 0x25d   :  { %3000 = vmatpush3.bf16.msra.mxu0 %v3154_v28  ;;  %2822 = vmatprep.subr.bf16.mxu1 %v3170_v29 }
 0x25e   :  { %3001 = vmatprep.subr.bf16.mxu0 %v3155_v54 }
 0x260   :  { %2823 = vmatpush3.bf16.msra.mxu1 %v3172_v44  ;;  %v1513_v44 = vld [vmem:[%s4006_s6] sm:$0x1] }
 0x261   :  { %3002 = vmatpush3.bf16.msra.mxu0 %v3155_v54  ;;  %2824 = vmatprep.subr.bf16.mxu1 %v3174_v31 }
 0x262   :  { %3003 = vmatprep.subr.bf16.mxu0 %v3156_v55 }
 0x264   :  { %2825 = vmatpush3.bf16.msra.mxu1 %v3176_v34 }
 0x265   :  { %3004 = vmatpush3.bf16.msra.mxu0 %v3156_v55  ;;  %2826 = vmatprep.subr.bf16.mxu1 %v3178_v35 }
 0x266   :  { %3009 = vmatprep.subr.bf16.mxu0 %v3238_v59 }
 0x268   :  { %3006 = vmatmul.mubr.bf16.vlgmr.msra.gmra.mxu0 %v672_v58  ;;  %2827 = vmatpush3.bf16.msra.mxu1 %v3180_v39 }
 0x269   :  { %3013 = vmatprep.mubr.msk.bf16.mxu0 %vm3239_vm0, %v3238_v59  ;;  %2828 = vmatprep.subr.bf16.mxu1 %v3182_v42 }
 0x2e7   :  { %v2703_v17 = vpop.f32.mrf.mxu0 }
 0x2e9   :  { %v2704_v19 = vpop.f32.mrf.mxu0 }
 0x2ea   :  { %v2705_v43 = vadd.f32 %v2704_v19, %v2703_v17 }
 0x2eb   :  { %v3720_v61 = vpop.f32.mrf.mxu0 }
 0x2ed   :  { %v2707_v62 = vpop.f32.mrf.mxu0 }
 0x2ee   :  { %v2708_v32 = vadd.f32 %v2707_v62, %v3720_v61 }
 0x2ef   :  { %v2709_v18 = vpop.f32.mrf.mxu0 }
 0x2f1   :  { %v2710_v20 = vpop.f32.mrf.mxu0 }
 0x2f2   :  { %v2711_v46 = vadd.f32 %v2710_v20, %v2709_v18 }
 0x2f3   :  { %v2712_v63 = vpop.f32.mrf.mxu0  ;;  %v2731_v1 = vpop.f32.mrf.mxu1 }
 0x2f5   :  { %v2713_v2 = vpop.f32.mrf.mxu0  ;;  %v2732_v3 = vpop.f32.mrf.mxu1 }
 0x2f6   :  { %v2733_v38 = vadd.f32 %v2732_v3, %v2731_v1 }
 0x2f7   :  { %v2734_v5 = vpop.f32.mrf.mxu1 }
 0x2f8   :  { %v1332_v47 = vadd.f32 %v2733_v38, %v2705_v43 }
 0x2f9   :  { %v2735_v6 = vpop.f32.mrf.mxu1 }
 0x2fa   :  { %v2736_v41 = vadd.f32 %v2735_v6, %v2734_v5 }
 0x2fb   :  { %v2737_v7 = vpop.f32.mrf.mxu1 }
 0x2fc   :  { %v1335_v53 = vadd.f32 %v2736_v41, %v2708_v32 }
 0x2fd   :  { %v2738_v8 = vpop.f32.mrf.mxu1 }
 0x2fe   :  { %v2739_v45 = vadd.f32 %v2738_v8, %v2737_v7 }
 0x2ff   :  { %v2740_v9 = vpop.f32.mrf.mxu1 }
 0x300   :  { %v1340_v36 = vadd.f32 %v2739_v45, %v2711_v46 }
 0x301   :  { %v2741_v10 = vpop.f32.mrf.mxu1 }
 0x307   :  { %v2759_v11 = vpop.f32.mrf.mxu0 }
 0x309   :  { %v2760_v12 = vpop.f32.mrf.mxu0 }
 0x30a   :  { %v2761_v24 = vadd.f32 %v2760_v12, %v2759_v11 }
 0x30b   :  { %v2762_v13 = vpop.f32.mrf.mxu0 }
 0x30c   :  { %v1380_v54 = vadd.f32 %v2761_v24, %v1332_v47 }
 0x30d   :  { %v2763_v14 = vpop.f32.mrf.mxu0 }
 0x30e   :  { %v2764_v49 = vadd.f32 %v2763_v14, %v2762_v13 }
 0x30f   :  { %v2765_v15 = vpop.f32.mrf.mxu0 }
 0x310   :  { %v1383_v1 = vadd.f32 %v2764_v49, %v1335_v53  ;;  %v3157_v53 = vld [vmem:[%s4004_s8] sm:$0xff]  }
 0x311   :  { %v2766_v4 = vpop.f32.mrf.mxu0 }
 0x312   :  { %v2767_v50 = vadd.f32 %v2766_v4, %v2765_v15 }
 0x313   :  { %v2768_v23 = vpop.f32.mrf.mxu0  ;;  %v2787_v56 = vpop.f32.mrf.mxu1 }
 0x314   :  { %v1388_v17 = vadd.f32 %v2767_v50, %v1340_v36  ;;  %v3171_v36 = vld [vmem:[%s4005_s9 + $0xf0] sm:$0xff]  }
 0x315   :  { %v2769_v26 = vpop.f32.mrf.mxu0  ;;  %v2788_v60 = vpop.f32.mrf.mxu1 }
 0x316   :  { %v2789_v51 = vadd.f32 %v2788_v60, %v2787_v56 }
 0x317   :  { %v2790_v27 = vpop.f32.mrf.mxu1 }
 0x318   :  { %v1428_v19 = vadd.f32 %v2789_v51, %v1380_v54  ;;  %v3167_v51 = vld [vmem:[%s4005_s9 + $0xf8] sm:$0xff]   ;;  %v3173_v54 = vld [vmem:[%s4005_s9 + $0xb0] sm:$0xff]  }
 0x319   :  { %v2791_v48 = vpop.f32.mrf.mxu1 }
 0x31a   :  { %v2792_v55 = vadd.f32 %v2791_v48, %v2790_v27 }
 0x31b   :  { %v2793_v30 = vpop.f32.mrf.mxu1 }
 0x31c   :  { %v1431_v62 = vadd.f32 %v2792_v55, %v1383_v1  ;;  %v3175_v55 = vld [vmem:[%s4005_s9 + $0xe8] sm:$0xff]   ;;  %v3179_v1 = vld [vmem:[%s4005_s9 + $0xe0] sm:$0xff]  }
 0x31d   :  { %v2794_v52 = vpop.f32.mrf.mxu1 }
 0x31e   :  { %v2795_v58 = vadd.f32 %v2794_v52, %v2793_v30 }
 0x31f   :  { %v2796_v33 = vpop.f32.mrf.mxu1 }
 0x320   :  { %v1436_v3 = vadd.f32 %v2795_v58, %v1388_v17  ;;  %v1517_v33 = vld [vmem:[%s4007_s7] sm:$0x1]  ;;  %v3158_v58 = vld [vmem:[%s4004_s8 + $0x8] sm:$0xff]  }
 0x321   :  { %v2797_v37 = vpop.f32.mrf.mxu1  ;;  %v3181_v17 = vld [vmem:[%s4005_s9 + $0xa0] sm:$0xff]  }
 0x328   :  { %v3007_v28 = vpop.f32.mrf.mxu0 }
 0x329   :  { %v1484_v20 = vadd.f32 %v3007_v28, %v1436_v3  ;;  %v3169_v28 = vld [vmem:[%s4005_s9 + $0xb8] sm:$0xff]  }
 0x32a   :  { %v1475_v63 = vpop.f32.mrf.mxu0  ;;  %v3160_v3 = vld [vmem:[%s4004_s8 + $0x18] sm:$0xff]  }
 0x32b   :  { %v1476_v61 = vadd.f32 %v1475_v63, %v1428_v19  ;;  %v1499_v9 = vmul.f32 %v1484_v20, %v1484_v20  ;;  %v3177_v63 = vld [vmem:[%s4005_s9 + $0xa8] sm:$0xff]   ;;  %v3183_v19 = vld [vmem:[%s4005_s9 + $0xd8] sm:$0xff]  }
 0x32c   :  { %v3008_v2 = vpop.f32.mrf.mxu0 }
 0x32d   :  { %v1497_v6 = vmul.f32 %v1476_v61, %v1476_v61  ;;  %v3159_v2 = vld [vmem:[%s4004_s8 + $0x10] sm:$0xff]  }
 0x32e   :  { %v1478_v18 = vpop.f32.mrf.mxu0 }
 0x32f   :  { %v1479_v5 = vadd.f32 %v1478_v18, %v1431_v62  ;;  %v3184_v62 = vld [vmem:[%s4005_s9 + $0x8] sm:$0xff]   ;;  %v3185_v18 = vld [vmem:[%s4005_s9 + $0x98] sm:$0xff]  }
 0x330   :  { %2829 = vmatpush3.bf16.msra.mxu1 %v3184_v62 }
 0x331   :  { %v1489_v7 = vadd.f32 %v1479_v5, %v1476_v61  ;;  %v1498_v8 = vmul.f32 %v1479_v5, %v1479_v5 }
 0x333   :  { %v1490_v10 = vadd.f32 %v1489_v7, %v1484_v20  ;;  %v1500_v11 = vadd.f32 %v1498_v8, %v1497_v6  ;;  %v3188_v6 = vld [vmem:[%s4005_s9] sm:$0xff]   ;;  %v3189_v7 = vld [vmem:[%s4005_s9 + $0x90] sm:$0xff]   ;;  %v3190_v8 = vld [vmem:[%s4005_s9 + $0xc8] sm:$0xff]  }
 0x335   :  { %v1491_v12 = vrot.slane %v1490_v10, 4  ;;  %v1501_v13 = vadd.f32 %v1500_v11, %v1499_v9  ;;  %v3191_v9 = vld [vmem:[%s4005_s9 + $0x178] sm:$0xff]   ;;  %v3194_v11 = vld [vmem:[%s4005_s9 + $0xc0] sm:$0xff]  }
 0x337   :  { %v1492_v14 = vadd.f32 %v1491_v12, %v1490_v10  ;;  %v1502_v15 = vrot.slane %v1501_v13, 4  ;;  %v3192_v10 = vld [vmem:[%s4005_s9 + $0x88] sm:$0xff]   ;;  %v3196_v12 = vld [vmem:[%s4005_s9 + $0x80] sm:$0xff]  }
 0x339   :  { %v1493_v16 = vrot.slane %v1492_v14, 2  ;;  %v1503_v4 = vadd.f32 %v1502_v15, %v1501_v13  ;;  %v3199_v13 = vld [vmem:[%s4005_s9 + $0x1f8] sm:$0xff]  }
 0x33b   :  { %v1494_v21 = vadd.f32 %v1493_v16, %v1492_v14  ;;  %v1504_v22 = vrot.slane %v1503_v4, 2 }
 0x33d   :  { %v1495_v23 = vrot.slane %v1494_v21, 1  ;;  %v1505_v56 = vadd.f32 %v1504_v22, %v1503_v4 }
 0x33f   :  { %v1496_v25 = vadd.f32 %v1495_v23, %v1494_v21  ;;  %v1506_v0 = vrot.slane %v1505_v56, 1  ;;  %v3193_v21 = vld [vmem:[%s4005_s9 + $0x138] sm:$0xff]  }
 0x341   :  { %v1507_v26 = vadd.f32 %v1506_v0, %v1505_v56  ;;  %v1508_v60 = vmul.f32 0.055555556, %v1496_v25  ;;  %v3195_v56 = vld [vmem:[%s4005_s9 + $0x170] sm:$0xff]  }
 0x342   :  { %v3197_v0 = vld [vmem:[%s4005_s9 + $0x130] sm:$0xff]  }
 0x343   :  { %v1509_v27 = vmul.f32 0.055555556, %v1507_v26  ;;  %v1510_v40 = vmul.f32 %v1508_v60, %v1508_v60 }
 0x345   :  { %v1511_v29 = vsub.f32 %v1509_v27, %v1510_v40 }
 0x347   :  { %v1512_v48 = vmax.f32 %v1511_v29, 0.0 }
 0x349   :  { %v1514_v30 = vadd.f32 1e-05, %v1512_v48  ;;  %v3200_v48 = vld [vmem:[%s4005_s9 + $0x128] sm:$0xff]  }
 0x34b   :  { %3236 = vrsqrt.f32 %v1514_v30  ;;  %v3201_v30 = vld [vmem:[%s4005_s9 + $0x1b8] sm:$0xff]  }
 0x358   :  { %v3237_v31 = vpop.eup %3236 }
 0x359   :  { %v1516_v52 = vmul.f32 %v3237_v31, %v1513_v44  ;;  %v3202_v44 = vld [vmem:[%s4005_s9 + $0x160] sm:$0xff]   ;;  %v3203_v31 = vld [vmem:[%s4005_s9 + $0x1f0] sm:$0xff]  }
 0x35b   :  { %v1518_v34 = vmul.f32 %v1516_v52, %v1508_v60  ;;  %v1524_v35 = vrot.slane %v1516_v52, %v3461_v57  ;;  %v3198_v60 = vld [vmem:[%s4005_s9 + $0x168] sm:$0xff]  }
 0x35d   :  { %v1519_v37 = vsub.f32 %v1517_v33, %v1518_v34  ;;  %v1528_v39 = vmul.f32 %v1524_v35, %v1484_v20  ;;  %v1527_v41 = vmul.f32 %v1524_v35, %v1479_v5  ;;  %v1526_v42 = vmul.f32 %v1524_v35, %v1476_v61  ;;  %v3161_v61 = vld [vmem:[%s4004_s8 + $0x20] ss:$0 sps:$4 sm:$0xff]   ;;  %v3187_v5 = vld [vmem:[%s4005_s9 + $0xd0] sm:$0xff]  }
 0x35e   :  { %v3186_v20 = vld [vmem:[%s4005_s9 + $0x40] sm:$0xff]   ;;  %v3205_v35 = vld [vmem:[%s4005_s9 + $0x1b0] sm:$0xff]  }
 0x35f   :  { %v1533_v38 = vrot.slane %v1519_v37, %v3461_v57  ;;  %2830 = vmatprep.subr.bf16.mxu1 %v3186_v20  ;;  %v3204_v34 = vld [vmem:[%s4005_s9 + $0x120] sm:$0xff]   ;;  %v3206_v37 = vld [vmem:[%s4005_s9 + $0x158] sm:$0xff]  }
 0x360   :  { %2831 = vmatpush3.bf16.msra.mxu1 %v3188_v6  ;;  %v3224_v20 = vld [vmem:[%s4005_s9 + $0x238] sm:$0xff]   ;;  %v3225_v6 = vld [vmem:[%s4005_s9 + $0x1c0] sm:$0xff]  }
 0x361   :  { %v1537_v43 = vadd.f32 %v1533_v38, %v1528_v39  ;;  %v1536_v45 = vadd.f32 %v1533_v38, %v1527_v41  ;;  %v1535_v24 = vadd.f32 %v1533_v38, %v1526_v42  ;;  %2860 = vmatprep.subr.bf16.mxu1 %v3191_v9  ;;  %v3207_v38 = vld [vmem:[%s4005_s9 + $0x1e8] sm:$0xff]   ;;  %v3208_v42 = vld [vmem:[%s4005_s9 + $0x118] sm:$0xff]   ;;  %v3227_v9 = vld [vmem:[%s4005_s9 + $0x230] sm:$0xff]  }
 0x363   :  { %v1540_v32 = vmax.f32 %v1537_v43, 0.0  ;;  %v1539_v47 = vmax.f32 %v1536_v45, 0.0  ;;  %v1538_v49 = vmax.f32 %v1535_v24, 0.0  ;;  %v3209_v43 = vld [vmem:[%s4005_s9 + $0x1a8] sm:$0xff]   ;;  %v3210_v24 = vld [vmem:[%s4005_s9 + $0x150] sm:$0xff]  }
 0x365   :  { %v1542_v46 = vpack.c.bf16 %v1540_v32, %v1540_v32  ;;  %v1541_v57 = vpack.c.bf16 %v1539_v47, %v1538_v49  ;;  %v3211_v32 = vld [vmem:[%s4005_s9 + $0x1e0] sm:$0xff]   ;;  %v3212_v49 = vld [vmem:[%s4005_s9 + $0x110] sm:$0xff]  }
 0x367   :  { %v1593_v50 = vsel %vm1591_vm1, %v1542_v46, 0 }
 0x368   :  { %3010 = vmatpush3.bf16.msra.mxu0 %v1593_v50  ;;  %v3213_v50 = vld [vmem:[%s4005_s9 + $0x1a0] sm:$0xff]  }
 0x369   :  { %3011 = vmatprep.subr.bf16.mxu0 %v3238_v59 }
 0x36c   :  { %3012 = vmatpush3.bf16.msra.mxu0 %v1541_v57  ;;  %v3215_v57 = vld [vmem:[%s4005_s9 + $0x1d8] sm:$0xff]  }
 0x36d   :  { %2838 = vmatprep.subr.bf16.mxu0 %v3167_v51  ;;  %v3214_v51 = vld [vmem:[%s4005_s9 + $0x148] sm:$0xff]  }
 0x36f   :  { %3014 = vmatmul.mubr.msk.bf16.vlgmr.msra.gmra.mxu0 %vm1575_vm2, %v3157_v53 }
 0x370   :  { %3017 = vmatprep.mubr.msk.bf16.mxu0 %vm3239_vm0, %v3238_v59  ;;  %2839 = vmatpush3.bf16.msra.mxu0 %v3169_v28 }
 0x371   :  { %2840 = vmatprep.subr.bf16.mxu0 %v3171_v36  ;;  %v3216_v36 = vld [vmem:[%s4005_s9 + $0x108] sm:$0xff]  }
 0x374   :  { %2841 = vmatpush3.bf16.msra.mxu0 %v3173_v54  ;;  %v3217_v54 = vld [vmem:[%s4005_s9 + $0x198] sm:$0xff]  }
 0x375   :  { %2842 = vmatprep.subr.bf16.mxu0 %v3175_v55 }
 0x377   :  { %3018 = vmatmul.mubr.msk.bf16.gmra.mxu0 %vm1575_vm2, %v3158_v58  ;;  %v3218_v58 = vld [vmem:[%s4005_s9 + $0x140] sm:$0xff]  }
 0x378   :  { %3021 = vmatprep.mubr.msk.bf16.mxu0 %vm3239_vm0, %v3238_v59  ;;  %2843 = vmatpush3.bf16.msra.mxu0 %v3177_v63  ;;  %v3219_v63 = vld [vmem:[%s4005_s9 + $0x1d0] sm:$0xff]  }
 0x379   :  { %2844 = vmatprep.subr.bf16.mxu0 %v3179_v1 }
 0x37c   :  { %2845 = vmatpush3.bf16.msra.mxu0 %v3181_v17 }
 0x37d   :  { %2846 = vmatprep.subr.bf16.mxu0 %v3183_v19  ;;  %v3220_v19 = vld [vmem:[%s4005_s9 + $0x100] sm:$0xff]  }
 0x37f   :  { %3022 = vmatmul.mubr.msk.bf16.gmra.mxu0 %vm1575_vm2, %v3159_v2  ;;  %v3221_v2 = vld [vmem:[%s4005_s9 + $0x190] sm:$0xff]  }
 0x380   :  { %3025 = vmatprep.mubr.msk.bf16.mxu0 %vm3239_vm0, %v3238_v59  ;;  %2847 = vmatpush3.bf16.msra.mxu0 %v3185_v18  ;;  %v3223_v18 = vld [vmem:[%s4005_s9 + $0x188] sm:$0xff]  }
 0x381   :  { %2848 = vmatprep.subr.bf16.mxu0 %v3187_v5 }
 0x384   :  { %2849 = vmatpush3.bf16.msra.mxu0 %v3189_v7 }
 0x385   :  { %2850 = vmatprep.subr.bf16.mxu0 %v3190_v8  ;;  %v3226_v8 = vld [vmem:[%s4005_s9 + $0x180] sm:$0xff]  }
 0x387   :  { %3026 = vmatmul.mubr.msk.bf16.gmra.mxu0 %vm1575_vm2, %v3160_v3  ;;  %v3222_v3 = vld [vmem:[%s4005_s9 + $0x1c8] sm:$0xff]  }
 0x388   :  { %3029 = vmatprep.mubr.msk.bf16.mxu0 %vm3239_vm0, %v3238_v59  ;;  %2851 = vmatpush3.bf16.msra.mxu0 %v3192_v10 }
 0x389   :  { %2852 = vmatprep.subr.bf16.mxu0 %v3194_v11  ;;  %v3228_v11 = vld [vmem:[%s4005_s9 + $0x228] sm:$0xff]  }
 0x38c   :  { %2853 = vmatpush3.bf16.msra.mxu0 %v3196_v12  ;;  %v3229_v12 = vld [vmem:[%s4005_s9 + $0x220] sm:$0xff]  }
 0x38d   :  { %2882 = vmatprep.subr.bf16.mxu0 %v3199_v13  ;;  %v3230_v13 = vld [vmem:[%s4005_s9 + $0x218] sm:$0xff]  }
 0x38f   :  { %3030 = vmatmul.mubr.msk.bf16.gmra.mxu0 %vm1575_vm2, %v3161_v61 }
 0x42f   :  { %v1629_v14 = vpop.f32.mrf.mxu0 }
 0x430   :  { %v1667_v22 = vpack.c.bf16 %v1629_v14, %v1629_v14  ;;  %v3231_v14 = vld [vmem:[%s4005_s9 + $0x210] sm:$0xff]  }
 0x431   :  { %v3015_v15 = vpop.f32.mrf.mxu0 }
 0x432   :  { %v3232_v15 = vld [vmem:[%s4005_s9 + $0x208] sm:$0xff]  }
 0x433   :  { %v1632_v16 = vpop.f32.mrf.mxu0 }
 0x434   :  { %v1668_v4 = vpack.c.bf16 %v1632_v16, %v1632_v16  ;;  %v3233_v16 = vld [vmem:[%s4005_s9 + $0x200] sm:$0xff]  }
 0x435   :  { %v3016_v23 = vpop.f32.mrf.mxu0 }
 0x436   :  { %2291 = vmatprep.mubr.bf16.mxu1 %v1668_v4 }
 0x437   :  { %v1637_v25 = vpop.f32.mrf.mxu0  ;;  %2292 = vmatmul.mubr.bf16.vlgmr.msra.gmra.mxu1 %v1667_v22 }
 0x438   :  { %2861 = vmatpush3.bf16.msra.mxu1 %v3193_v21  ;;  %v1669_v27 = vpack.c.bf16 %v1637_v25, %v1637_v25 }
 0x439   :  { %v3019_v26 = vpop.f32.mrf.mxu0  ;;  %2862 = vmatprep.subr.bf16.mxu1 %v3195_v56 }
 0x43b   :  { %v1640_v40 = vpop.f32.mrf.mxu0 }
 0x43c   :  { %v1670_v29 = vpack.c.bf16 %v1640_v40, %v1640_v40  ;;  %2863 = vmatpush3.bf16.msra.mxu1 %v3197_v0 }
 0x43d   :  { %2864 = vmatprep.subr.bf16.mxu1 %v3198_v60  ;;  %v3020_v52 = vpop.f32.mrf.mxu0 }
 0x43e   :  { %2331 = vmatprep.mubr.bf16.mxu0 %v1670_v29 }
 0x43f   :  { %2332 = vmatmul.mubr.bf16.vlgmr.msra.gmra.mxu0 %v1669_v27  ;;  %v3888_v33 = vpop.f32.mrf.mxu0 }
 0x440   :  { %2865 = vmatpush3.bf16.msra.mxu1 %v3200_v48  ;;  %2883 = vmatpush3.bf16.msra.mxu0 %v3201_v30  ;;  %v1671_v5 = vpack.c.bf16 %v3888_v33, %v3888_v33  ;;  %v2576_v33 = vld [vmem:[%s4008_s10] ss:$0 sm:$0xff] }
 0x441   :  { %2866 = vmatprep.subr.bf16.mxu1 %v3202_v44  ;;  %2884 = vmatprep.subr.bf16.mxu0 %v3203_v31  ;;  %v3023_v39 = vpop.f32.mrf.mxu0 }
 0x443   :  { %v1648_v41 = vpop.f32.mrf.mxu0 }
 0x444   :  { %2867 = vmatpush3.bf16.msra.mxu1 %v3204_v34  ;;  %2885 = vmatpush3.bf16.msra.mxu0 %v3205_v35  ;;  %v1672_v45 = vpack.c.bf16 %v1648_v41, %v1648_v41 }
 0x445   :  { %2868 = vmatprep.subr.bf16.mxu1 %v3206_v37  ;;  %2886 = vmatprep.subr.bf16.mxu0 %v3207_v38  ;;  %v3024_v46 = vpop.f32.mrf.mxu0 }
 0x446   :  { %2371 = vmatprep.mubr.bf16.mxu1 %v1672_v45 }
 0x447   :  { %v1653_v47 = vpop.f32.mrf.mxu0 }
 0x448   :  { %2869 = vmatpush3.bf16.msra.mxu1 %v3208_v42  ;;  %2887 = vmatpush3.bf16.msra.mxu0 %v3209_v43  ;;  %v1673_v10 = vpack.c.bf16 %v1653_v47, %v1653_v47 }
 0x449   :  { %2870 = vmatprep.subr.bf16.mxu1 %v3210_v24  ;;  %2888 = vmatprep.subr.bf16.mxu0 %v3211_v32  ;;  %v3027_v53 = vpop.f32.mrf.mxu0 }
 0x44b   :  { %v1656_v28 = vpop.f32.mrf.mxu0 }
 0x44c   :  { %2871 = vmatpush3.bf16.msra.mxu1 %v3212_v49  ;;  %2889 = vmatpush3.bf16.msra.mxu0 %v3213_v50  ;;  %v1674_v55 = vpack.c.bf16 %v1656_v28, %v1656_v28 }
 0x44d   :  { %2872 = vmatprep.subr.bf16.mxu1 %v3214_v51  ;;  %2890 = vmatprep.subr.bf16.mxu0 %v3215_v57  ;;  %v3028_v1 = vpop.f32.mrf.mxu0 }
 0x44e   :  { %2411 = vmatprep.mubr.bf16.mxu0 %v1674_v55 }
 0x44f   :  { %v1661_v17 = vpop.f32.mrf.mxu0 }
 0x450   :  { %2873 = vmatpush3.bf16.msra.mxu1 %v3216_v36  ;;  %2891 = vmatpush3.bf16.msra.mxu0 %v3217_v54  ;;  %v1675_v4 = vpack.c.bf16 %v1661_v17, %v1661_v17 }
 0x451   :  { %2874 = vmatprep.subr.bf16.mxu1 %v3218_v58  ;;  %2892 = vmatprep.subr.bf16.mxu0 %v3219_v63  ;;  %v3031_v61 = vpop.f32.mrf.mxu0 }
 0x453   :  { %v1664_v62 = vpop.f32.mrf.mxu0 }
 0x454   :  { %2875 = vmatpush3.bf16.msra.mxu1 %v3220_v19  ;;  %2893 = vmatpush3.bf16.msra.mxu0 %v3221_v2 }
 0x455   :  { %2894 = vmatprep.subr.bf16.mxu0 %v3222_v3  ;;  %3033 = vmatprep.subr.bf16.mxu1 %v3238_v59  ;;  %v3032_v7 = vpop.f32.mrf.mxu0 }
 0x457   :  { %2372 = vmatmul.mubr.bf16.vlgmr.msra.gmra.mxu1 %v1671_v5 }
 0x458   :  { %2895 = vmatpush3.bf16.msra.mxu0 %v3223_v18  ;;  %3034 = vmatpush3.bf16.msra.mxu1 %v3224_v20 }
 0x459   :  { %2896 = vmatprep.subr.bf16.mxu0 %v3225_v6  ;;  %3035 = vmatprep.subr.bf16.mxu1 %v3238_v59 }
 0x45a   :  { %3049 = vmatprep.mubr.msk.bf16.mxu1 %vm3239_vm0, %v3238_v59 }
 0x45c   :  { %2897 = vmatpush3.bf16.msra.mxu0 %v3226_v8  ;;  %3036 = vmatpush3.bf16.msra.mxu1 %v3227_v9 }
 0x45d   :  { %3037 = vmatprep.subr.bf16.mxu1 %v3238_v59 }
 0x45f   :  { %2412 = vmatmul.mubr.bf16.vlgmr.msra.gmra.mxu0 %v1673_v10 }
 0x460   :  { %3038 = vmatpush3.bf16.msra.mxu1 %v3228_v11 }
 0x461   :  { %3039 = vmatprep.subr.bf16.mxu1 %v3238_v59 }
 0x464   :  { %3040 = vmatpush3.bf16.msra.mxu1 %v3229_v12 }
 0x465   :  { %3041 = vmatprep.subr.bf16.mxu1 %v3238_v59 }
 0x468   :  { %3042 = vmatpush3.bf16.msra.mxu1 %v3230_v13 }
 0x469   :  { %3043 = vmatprep.subr.bf16.mxu1 %v3238_v59 }
 0x46c   :  { %3044 = vmatpush3.bf16.msra.mxu1 %v3231_v14 }
 0x46d   :  { %3045 = vmatprep.subr.bf16.mxu1 %v3238_v59 }
 0x470   :  { %3046 = vmatpush3.bf16.msra.mxu1 %v3232_v15 }
 0x471   :  { %3047 = vmatprep.subr.bf16.mxu1 %v3238_v59 }
 0x474   :  { %3048 = vmatpush3.bf16.msra.mxu1 %v3233_v16 }
 0x477   :  { %3050 = vmatmul.mubr.bf16.vlgmr.msra.gmra.mxu1 %v1675_v4 }
 0x4f7   :  { %v2832_v21 = vpop.f32.mrf.mxu1 }
 0x4f9   :  { %v2833_v22 = vpop.f32.mrf.mxu1 }
 0x4fa   :  { %v2834_v59 = vadd.f32 %v2833_v22, %v2832_v21 }
 0x4fb   :  { %v2835_v23 = vpop.f32.mrf.mxu1 }
 0x4fc   :  { %v2294_v35 = vadd.f32 %v2834_v59, %v2576_v33 }
 0x4fd   :  { %v2836_v56 = vpop.f32.mrf.mxu1 }
 0x4ff   :  { %v2854_v25 = vpop.f32.mrf.mxu0 }
 0x501   :  { %v2855_v0 = vpop.f32.mrf.mxu0 }
 0x502   :  { %v2856_v34 = vadd.f32 %v2855_v0, %v2854_v25 }
 0x503   :  { %v2857_v26 = vpop.f32.mrf.mxu0 }
 0x504   :  { %v2334_v38 = vadd.f32 %v2856_v34, %v2294_v35 }
 0x505   :  { %v2858_v60 = vpop.f32.mrf.mxu0 }
 0x517   :  { %v2876_v27 = vpop.f32.mrf.mxu1 }
 0x519   :  { %v2877_v40 = vpop.f32.mrf.mxu1 }
 0x51a   :  { %v2878_v37 = vadd.f32 %v2877_v40, %v2876_v27 }
 0x51b   :  { %v2879_v29 = vpop.f32.mrf.mxu1 }
 0x51c   :  { %v2374_v41 = vadd.f32 %v2878_v37, %v2334_v38 }
 0x51d   :  { %v2880_v48 = vpop.f32.mrf.mxu1 }
 0x51f   :  { %v2898_v30 = vpop.f32.mrf.mxu0 }
 0x521   :  { %v2899_v44 = vpop.f32.mrf.mxu0 }
 0x522   :  { %v2900_v39 = vadd.f32 %v2899_v44, %v2898_v30 }
 0x523   :  { %v2901_v31 = vpop.f32.mrf.mxu0 }
 0x524   :  { %v2414_v42 = vadd.f32 %v2900_v39, %v2374_v41 }
 0x525   :  { %v2902_v52 = vpop.f32.mrf.mxu0 }
 0x537   :  { %v2453_v43 = vpop.f32.mrf.mxu1 }
 0x538   :  { %v2454_v45 = vadd.f32 %v2453_v43, %v2414_v42 }
 0x539   :  { %v3051_v24 = vpop.f32.mrf.mxu1 }
 0x53a   :  { %2459 = vst [vmem:[%s4009_s11] sm:$0xff] %v2454_v45 }
 0x53b   :  { %v2456_v32 = vpop.f32.mrf.mxu1 }
 0x53d   :  { %v3052_v46 = vpop.f32.mrf.mxu1 }

</bundles_post_ra>
